<compile_context>
chip_gen: v7x
topology: tpu7x:2x2x1
jax: 0.10.0
libtpu: 0.0.40
codegen_flags: <defaults>
</compile_context>

<pallas_src>
import functools

import jax
import jax.numpy as jnp
import numpy as np
from jax.experimental import pallas as pl
from jax.experimental.pallas import tpu as pltpu

CIN = 4                 # input channels
CF = 32                 # conv feature channels
K = 8                   # number of object classes
DH = 3 + 6 + 1 + K      # head width: means(3) + cov(6) + weight(1) + logits(K)


def _skeleton_recon_kernel(x_ref, wconv_ref, bconv_ref, whead_ref, bhead_ref,
                           heads_ref, feat_ref, *, wpad, rows_out):
    # x_ref: (1, 1, ROWS_IN, CIN) bf16 — one halo'd row tile, flattened pixel-major
    #        over the zero-padded (tile_h+2) x (W+2) window, with >=2 extra zero rows
    #        at the end so every shifted view below stays in bounds.
    xt = x_ref[0, 0].astype(jnp.float32)               # upcast once: (ROWS_IN, CIN)

    # 3x3 conv fused as 9 shifted matmuls — im2col never touches HBM. Output row
    # o = r*(W+2)+c; tap (dy,dx) reads input row o + dy*(W+2) + dx. Rows with
    # c in {W, W+1} are harmless garbage that the wrapper slices away.
    acc = None
    for dy in range(3):
        for dx in range(3):
            off = dy * wpad + dx                        # static offsets
            tap = jnp.dot(xt[off:off + rows_out, :], wconv_ref[dy * 3 + dx],
                          preferred_element_type=jnp.float32)
            acc = tap if acc is None else acc + tap
    feat = jnp.maximum(acc + bconv_ref[...], 0.0)       # (rows_out, CF) f32, bias+ReLU

    # All Gaussian-parameter heads fused into one matmul -> one DH-wide slab.
    heads = jnp.dot(feat, whead_ref[...], preferred_element_type=jnp.float32)
    heads = heads + bhead_ref[...]                       # (rows_out, DH)

    # Lane-masked epilogue on the whole slab (no sub-lane slicing):
    #   lanes 3..8  -> softplus (cov), lane 9 -> sigmoid (weight),
    #   lanes 0..2 (means) and 10..10+K (raw class logits) pass through.
    col = jax.lax.broadcasted_iota(jnp.int32, heads.shape, 1)
    softplus = jnp.maximum(heads, 0.0) + jnp.log1p(jnp.exp(-jnp.abs(heads)))
    sigmoid = 1.0 / (1.0 + jnp.exp(-heads))
    heads = jnp.where((col >= 3) & (col < 9), softplus,
                      jnp.where(col == 9, sigmoid, heads))

    heads_ref[0, 0] = heads                              # single f32 slab store
    feat_ref[0, 0] = feat.astype(jnp.bfloat16)           # bf16 feature writeback


def init_params(key):
    k1, k2, k3, k4 = jax.random.split(key, 4)
    wconv = jax.random.normal(k1, (9 * CIN, CF), jnp.float32) * 0.1   # 3x3 conv weights
    bconv = jax.random.normal(k2, (1, CF), jnp.float32) * 0.01
    whead = jax.random.normal(k3, (CF, DH), jnp.float32) * 0.1
    bhead = jax.random.normal(k4, (1, DH), jnp.float32) * 0.01
    return wconv, bconv, whead, bhead


@functools.partial(jax.jit, static_argnames=("tile_h",))
def skeleton_splatter_forward(x, wconv, bconv, whead, bhead, tile_h=8):
    B, C, H, W = x.shape
    assert C == CIN, (C, CIN)
    assert H % tile_h == 0, "tile_h must divide H (ragged tiles not handled)"
    n_tiles = H // tile_h
    WP = W + 2                                   # padded width
    ROWS_OUT = tile_h * WP                       # per-tile output rows (incl. 2 junk cols/row)
    ROWS_IN = -(-((tile_h + 2) * WP + 2) // 8) * 8   # padded input rows, mult of 8

    # Wrapper glue: NCHW -> NHWC, zero-pad, halo'd row tiles, pixel-major flatten, bf16.
    x_nhwc = jnp.transpose(x, (0, 2, 3, 1))
    xpad = jnp.pad(x_nhwc, ((0, 0), (1, 1), (1, 1), (0, 0)))
    tiles = jnp.stack(
        [xpad[:, t * tile_h: t * tile_h + tile_h + 2] for t in range(n_tiles)], axis=1)
    x_tiles = tiles.reshape(B, n_tiles, (tile_h + 2) * WP, CIN)
    x_tiles = jnp.pad(
        x_tiles, ((0, 0), (0, 0), (0, ROWS_IN - (tile_h + 2) * WP), (0, 0)))
    x_tiles = x_tiles.astype(jnp.bfloat16)       # halves input HBM bytes

    wconv_taps = wconv.reshape(9, CIN, CF)       # one (CIN, CF) weight per 3x3 tap

    kernel = functools.partial(_skeleton_recon_kernel, wpad=WP, rows_out=ROWS_OUT)

    heads_out, feat_out = pl.pallas_call(
        kernel,
        out_shape=(
            jax.ShapeDtypeStruct((B, n_tiles, ROWS_OUT, DH), jnp.float32),   # head slab
            jax.ShapeDtypeStruct((B, n_tiles, ROWS_OUT, CF), jnp.bfloat16),  # features
        ),
        grid_spec=pltpu.PrefetchScalarGridSpec(
            num_scalar_prefetch=0,
            grid=(B, n_tiles),
            in_specs=[
                pl.BlockSpec((1, 1, ROWS_IN, CIN), lambda b, t: (b, t, 0, 0)),
                pl.BlockSpec((9, CIN, CF), lambda b, t: (0, 0, 0)),
                pl.BlockSpec((1, CF), lambda b, t: (0, 0)),
                pl.BlockSpec((CF, DH), lambda b, t: (0, 0)),
                pl.BlockSpec((1, DH), lambda b, t: (0, 0)),
            ],
            out_specs=[
                pl.BlockSpec((1, 1, ROWS_OUT, DH), lambda b, t: (b, t, 0, 0)),
                pl.BlockSpec((1, 1, ROWS_OUT, CF), lambda b, t: (b, t, 0, 0)),
            ],
        ),
        compiler_params=pltpu.CompilerParams(
            dimension_semantics=("parallel", "parallel"),
            # Per-tile working set is well under 1 MiB; explicit limit leaves headroom
            # for larger H/W/tile_h while staying safe on v5e/v6e/v7x.
            vmem_limit_bytes=32 * 1024 * 1024,
        ),
    )(x_tiles, wconv_taps, bconv, whead, bhead)

    # Drop the 2 junk columns per image row and split the slabs. These slices fuse with
    # the copies XLA must do anyway to materialize the separately-returned arrays.
    heads = heads_out.reshape(B, n_tiles, tile_h, WP, DH)[:, :, :, :W, :]
    heads = heads.reshape(B, H * W, DH)
    feat = feat_out.reshape(B, n_tiles, tile_h, WP, CF)[:, :, :, :W, :]
    feat = feat.reshape(B, H, W, CF)

    means_3d = heads[..., 0:3]
    cov_3d = heads[..., 3:9]
    weight_3d = heads[..., 9:10]
    object_index = jnp.argmax(heads[..., 10:10 + K], axis=-1).astype(jnp.int32)  # (B, N)
    feature_map = jnp.transpose(feat.astype(jnp.float32), (0, 3, 1, 2))          # NCHW
    return means_3d, cov_3d, weight_3d, object_index, feature_map


# ----------------------------- pure-JAX reference -----------------------------

def _im2col_3x3(x_nchw):
    B, C, H, W = x_nchw.shape
    x_nhwc = jnp.transpose(x_nchw, (0, 2, 3, 1))
    xpad = jnp.pad(x_nhwc, ((0, 0), (1, 1), (1, 1), (0, 0)))
    cols = []
    for dy in range(3):
        for dx in range(3):
            cols.append(xpad[:, dy:dy + H, dx:dx + W, :].reshape(B, H * W, C))
    return jnp.concatenate(cols, axis=-1)                           # (B, N, 9*C)


def reference_forward(x, wconv, bconv, whead, bhead):
    """f32 reference of the same synthetic SkeletonRecon. Also returns class logits."""
    B, C, H, W = x.shape
    patches = _im2col_3x3(x)
    feat = jnp.maximum(jnp.einsum("bnc,cf->bnf", patches, wconv) + bconv, 0.0)
    heads = jnp.einsum("bnf,fd->bnd", feat, whead) + bhead
    means = heads[..., 0:3]
    cov = jax.nn.softplus(heads[..., 3:9])
    wt = jax.nn.sigmoid(heads[..., 9:10])
    logits = heads[..., 10:10 + K]
    obj = jnp.argmax(logits, axis=-1).astype(jnp.int32)
    fmap = jnp.transpose(feat.reshape(B, H, W, CF), (0, 3, 1, 2))
    return (means, cov, wt, obj, fmap), logits


if __name__ == "__main__":
    key = jax.random.PRNGKey(0)
    kx, kp = jax.random.split(key)
    B, H, W = 2, 16, 16
    x = jax.random.normal(kx, (B, CIN, H, W), jnp.float32)
    params = init_params(kp)

    outs = jax.block_until_ready(skeleton_splatter_forward(x, *params))
    refs, ref_logits = reference_forward(x, *params)

    names = ["means_3d", "cov_3d", "weight_3d", "object_index", "feature_map"]
    for name, got, ref in zip(names, outs, refs):
        assert got.shape == ref.shape, (name, got.shape, ref.shape)

    # bf16 input / bf16 feature path => slightly loosened tolerances (per perf review).
    for idx in (0, 1, 2, 4):
        np.testing.assert_allclose(np.asarray(outs[idx]), np.asarray(refs[idx]),
                                   rtol=3e-2, atol=3e-2, err_msg=names[idx])

    # object_index: exact agreement wherever the reference top-2 logit gap is
    # non-trivial; bf16 rounding may legitimately flip near-ties, so require only
    # >=90% agreement overall.
    got_obj = np.asarray(outs[3])
    ref_obj = np.asarray(refs[3])
    srt = np.sort(np.asarray(ref_logits), axis=-1)
    gap = srt[..., -1] - srt[..., -2]
    confident = gap > 0.05
    assert np.array_equal(got_obj[confident], ref_obj[confident]), "argmax mismatch on confident pixels"
    assert float(np.mean(got_obj == ref_obj)) >= 0.9, "argmax agreement too low"

    print("KERNEL_OK")
</pallas_src>

<mosaic_0001>
module attributes {stable_mosaic.version = 11 : i64} {
  func.func @_skeleton_recon_kernel(%arg0: i32, %arg1: i32, %arg2: memref<1x1x184x4xbf16, #tpu.memory_space<vmem>>, %arg3: memref<9x4x32xf32, #tpu.memory_space<vmem>>, %arg4: memref<1x32xf32, #tpu.memory_space<vmem>>, %arg5: memref<32x18xf32, #tpu.memory_space<vmem>>, %arg6: memref<1x18xf32, #tpu.memory_space<vmem>>, %arg7: memref<1x1x144x18xf32, #tpu.memory_space<vmem>>, %arg8: memref<1x1x144x32xbf16, #tpu.memory_space<vmem>>) attributes {dimension_semantics = [#tpu.dimension_semantics<parallel>, #tpu.dimension_semantics<parallel>], iteration_bounds = array<i64: 2, 2>, scalar_prefetch = 0 : i64, scratch_operands = 0 : i64, tpu.core_type = #tpu.core_type<tc>, window_params = [{transform_indices = @transform_0, window_bounds = array<i64: 1, 1, 184, 4>}, {pipeline_mode = #tpu.pipeline_mode<synchronous>, transform_indices = @transform_1, window_bounds = array<i64: 9, 4, 32>}, {pipeline_mode = #tpu.pipeline_mode<synchronous>, transform_indices = @transform_2, window_bounds = array<i64: 1, 32>}, {pipeline_mode = #tpu.pipeline_mode<synchronous>, transform_indices = @transform_3, window_bounds = array<i64: 32, 18>}, {pipeline_mode = #tpu.pipeline_mode<synchronous>, transform_indices = @transform_4, window_bounds = array<i64: 1, 18>}, {transform_indices = @transform_5, window_bounds = array<i64: 1, 1, 144, 18>}, {transform_indices = @transform_6, window_bounds = array<i64: 1, 1, 144, 32>}]} {
    %c0 = arith.constant 0 : index
    %c0_0 = arith.constant 0 : index
    %c0_1 = arith.constant 0 : index
    %c0_2 = arith.constant 0 : index
    %0 = vector.load %arg2[%c0, %c0_0, %c0_1, %c0_2] : memref<1x1x184x4xbf16, #tpu.memory_space<vmem>>, vector<1x1x184x4xbf16>
    %1 = vector.shape_cast %0 : vector<1x1x184x4xbf16> to vector<184x4xbf16>
    %2 = arith.extf %1 : vector<184x4xbf16> to vector<184x4xf32>
    %3 = vector.extract_strided_slice %2 {offsets = [0, 0], sizes = [144, 4], strides = [1, 1]} : vector<184x4xf32> to vector<144x4xf32>
    %c0_3 = arith.constant 0 : index
    %c0_4 = arith.constant 0 : index
    %c0_5 = arith.constant 0 : index
    %4 = vector.load %arg3[%c0_3, %c0_4, %c0_5] : memref<9x4x32xf32, #tpu.memory_space<vmem>>, vector<1x4x32xf32>
    %5 = vector.shape_cast %4 : vector<1x4x32xf32> to vector<4x32xf32>
    %cst = arith.constant dense<0.000000e+00> : vector<144x32xf32>
    %6 = tpu.matmul %3, %5, %cst {dimension_numbers = #tpu.dot_dimension_numbers<[1], [0], [0], [1], [0, 0, 1, 1], [], []>} : vector<144x4xf32>, vector<4x32xf32>, vector<144x32xf32> -> vector<144x32xf32>
    %7 = vector.extract_strided_slice %2 {offsets = [1, 0], sizes = [144, 4], strides = [1, 1]} : vector<184x4xf32> to vector<144x4xf32>
    %c1 = arith.constant 1 : index
    %c0_6 = arith.constant 0 : index
    %c0_7 = arith.constant 0 : index
    %8 = vector.load %arg3[%c1, %c0_6, %c0_7] : memref<9x4x32xf32, #tpu.memory_space<vmem>>, vector<1x4x32xf32>
    %9 = vector.shape_cast %8 : vector<1x4x32xf32> to vector<4x32xf32>
    %cst_8 = arith.constant dense<0.000000e+00> : vector<144x32xf32>
    %10 = tpu.matmul %7, %9, %cst_8 {dimension_numbers = #tpu.dot_dimension_numbers<[1], [0], [0], [1], [0, 0, 1, 1], [], []>} : vector<144x4xf32>, vector<4x32xf32>, vector<144x32xf32> -> vector<144x32xf32>
    %11 = arith.addf %6, %10 : vector<144x32xf32>
    %12 = vector.extract_strided_slice %2 {offsets = [2, 0], sizes = [144, 4], strides = [1, 1]} : vector<184x4xf32> to vector<144x4xf32>
    %c2 = arith.constant 2 : index
    %c0_9 = arith.constant 0 : index
    %c0_10 = arith.constant 0 : index
    %13 = vector.load %arg3[%c2, %c0_9, %c0_10] : memref<9x4x32xf32, #tpu.memory_space<vmem>>, vector<1x4x32xf32>
    %14 = vector.shape_cast %13 : vector<1x4x32xf32> to vector<4x32xf32>
    %cst_11 = arith.constant dense<0.000000e+00> : vector<144x32xf32>
    %15 = tpu.matmul %12, %14, %cst_11 {dimension_numbers = #tpu.dot_dimension_numbers<[1], [0], [0], [1], [0, 0, 1, 1], [], []>} : vector<144x4xf32>, vector<4x32xf32>, vector<144x32xf32> -> vector<144x32xf32>
    %16 = arith.addf %11, %15 : vector<144x32xf32>
    %17 = vector.extract_strided_slice %2 {offsets = [18, 0], sizes = [144, 4], strides = [1, 1]} : vector<184x4xf32> to vector<144x4xf32>
    %c3 = arith.constant 3 : index
    %c0_12 = arith.constant 0 : index
    %c0_13 = arith.constant 0 : index
    %18 = vector.load %arg3[%c3, %c0_12, %c0_13] : memref<9x4x32xf32, #tpu.memory_space<vmem>>, vector<1x4x32xf32>
    %19 = vector.shape_cast %18 : vector<1x4x32xf32> to vector<4x32xf32>
    %cst_14 = arith.constant dense<0.000000e+00> : vector<144x32xf32>
    %20 = tpu.matmul %17, %19, %cst_14 {dimension_numbers = #tpu.dot_dimension_numbers<[1], [0], [0], [1], [0, 0, 1, 1], [], []>} : vector<144x4xf32>, vector<4x32xf32>, vector<144x32xf32> -> vector<144x32xf32>
    %21 = arith.addf %16, %20 : vector<144x32xf32>
    %22 = vector.extract_strided_slice %2 {offsets = [19, 0], sizes = [144, 4], strides = [1, 1]} : vector<184x4xf32> to vector<144x4xf32>
    %c4 = arith.constant 4 : index
    %c0_15 = arith.constant 0 : index
    %c0_16 = arith.constant 0 : index
    %23 = vector.load %arg3[%c4, %c0_15, %c0_16] : memref<9x4x32xf32, #tpu.memory_space<vmem>>, vector<1x4x32xf32>
    %24 = vector.shape_cast %23 : vector<1x4x32xf32> to vector<4x32xf32>
    %cst_17 = arith.constant dense<0.000000e+00> : vector<144x32xf32>
    %25 = tpu.matmul %22, %24, %cst_17 {dimension_numbers = #tpu.dot_dimension_numbers<[1], [0], [0], [1], [0, 0, 1, 1], [], []>} : vector<144x4xf32>, vector<4x32xf32>, vector<144x32xf32> -> vector<144x32xf32>
    %26 = arith.addf %21, %25 : vector<144x32xf32>
    %27 = vector.extract_strided_slice %2 {offsets = [20, 0], sizes = [144, 4], strides = [1, 1]} : vector<184x4xf32> to vector<144x4xf32>
    %c5 = arith.constant 5 : index
    %c0_18 = arith.constant 0 : index
    %c0_19 = arith.constant 0 : index
    %28 = vector.load %arg3[%c5, %c0_18, %c0_19] : memref<9x4x32xf32, #tpu.memory_space<vmem>>, vector<1x4x32xf32>
    %29 = vector.shape_cast %28 : vector<1x4x32xf32> to vector<4x32xf32>
    %cst_20 = arith.constant dense<0.000000e+00> : vector<144x32xf32>
    %30 = tpu.matmul %27, %29, %cst_20 {dimension_numbers = #tpu.dot_dimension_numbers<[1], [0], [0], [1], [0, 0, 1, 1], [], []>} : vector<144x4xf32>, vector<4x32xf32>, vector<144x32xf32> -> vector<144x32xf32>
    %31 = arith.addf %26, %30 : vector<144x32xf32>
    %32 = vector.extract_strided_slice %2 {offsets = [36, 0], sizes = [144, 4], strides = [1, 1]} : vector<184x4xf32> to vector<144x4xf32>
    %c6 = arith.constant 6 : index
    %c0_21 = arith.constant 0 : index
    %c0_22 = arith.constant 0 : index
    %33 = vector.load %arg3[%c6, %c0_21, %c0_22] : memref<9x4x32xf32, #tpu.memory_space<vmem>>, vector<1x4x32xf32>
    %34 = vector.shape_cast %33 : vector<1x4x32xf32> to vector<4x32xf32>
    %cst_23 = arith.constant dense<0.000000e+00> : vector<144x32xf32>
    %35 = tpu.matmul %32, %34, %cst_23 {dimension_numbers = #tpu.dot_dimension_numbers<[1], [0], [0], [1], [0, 0, 1, 1], [], []>} : vector<144x4xf32>, vector<4x32xf32>, vector<144x32xf32> -> vector<144x32xf32>
    %36 = arith.addf %31, %35 : vector<144x32xf32>
    %37 = vector.extract_strided_slice %2 {offsets = [37, 0], sizes = [144, 4], strides = [1, 1]} : vector<184x4xf32> to vector<144x4xf32>
    %c7 = arith.constant 7 : index
    %c0_24 = arith.constant 0 : index
    %c0_25 = arith.constant 0 : index
    %38 = vector.load %arg3[%c7, %c0_24, %c0_25] : memref<9x4x32xf32, #tpu.memory_space<vmem>>, vector<1x4x32xf32>
    %39 = vector.shape_cast %38 : vector<1x4x32xf32> to vector<4x32xf32>
    %cst_26 = arith.constant dense<0.000000e+00> : vector<144x32xf32>
    %40 = tpu.matmul %37, %39, %cst_26 {dimension_numbers = #tpu.dot_dimension_numbers<[1], [0], [0], [1], [0, 0, 1, 1], [], []>} : vector<144x4xf32>, vector<4x32xf32>, vector<144x32xf32> -> vector<144x32xf32>
    %41 = arith.addf %36, %40 : vector<144x32xf32>
    %42 = vector.extract_strided_slice %2 {offsets = [38, 0], sizes = [144, 4], strides = [1, 1]} : vector<184x4xf32> to vector<144x4xf32>
    %c8 = arith.constant 8 : index
    %c0_27 = arith.constant 0 : index
    %c0_28 = arith.constant 0 : index
    %43 = vector.load %arg3[%c8, %c0_27, %c0_28] : memref<9x4x32xf32, #tpu.memory_space<vmem>>, vector<1x4x32xf32>
    %44 = vector.shape_cast %43 : vector<1x4x32xf32> to vector<4x32xf32>
    %cst_29 = arith.constant dense<0.000000e+00> : vector<144x32xf32>
    %45 = tpu.matmul %42, %44, %cst_29 {dimension_numbers = #tpu.dot_dimension_numbers<[1], [0], [0], [1], [0, 0, 1, 1], [], []>} : vector<144x4xf32>, vector<4x32xf32>, vector<144x32xf32> -> vector<144x32xf32>
    %46 = arith.addf %41, %45 : vector<144x32xf32>
    %c0_30 = arith.constant 0 : index
    %c0_31 = arith.constant 0 : index
    %47 = vector.load %arg4[%c0_30, %c0_31] : memref<1x32xf32, #tpu.memory_space<vmem>>, vector<1x32xf32>
    %48 = vector.broadcast %47 : vector<1x32xf32> to vector<144x32xf32>
    %49 = arith.addf %46, %48 : vector<144x32xf32>
    %cst_32 = arith.constant 0.000000e+00 : f32
    %50 = vector.broadcast %cst_32 : f32 to vector<144x32xf32>
    %51 = arith.maximumf %49, %50 : vector<144x32xf32>
    %c0_33 = arith.constant 0 : index
    %c0_34 = arith.constant 0 : index
    %52 = vector.load %arg5[%c0_33, %c0_34] : memref<32x18xf32, #tpu.memory_space<vmem>>, vector<32x18xf32>
    %cst_35 = arith.constant dense<0.000000e+00> : vector<144x18xf32>
    %53 = tpu.matmul %51, %52, %cst_35 {dimension_numbers = #tpu.dot_dimension_numbers<[1], [0], [0], [1], [0, 0, 1, 1], [], []>} : vector<144x32xf32>, vector<32x18xf32>, vector<144x18xf32> -> vector<144x18xf32>
    %c0_36 = arith.constant 0 : index
    %c0_37 = arith.constant 0 : index
    %54 = vector.load %arg6[%c0_36, %c0_37] : memref<1x18xf32, #tpu.memory_space<vmem>>, vector<1x18xf32>
    %55 = vector.broadcast %54 : vector<1x18xf32> to vector<144x18xf32>
    %56 = arith.addf %53, %55 : vector<144x18xf32>
    %57 = tpu.iota {dimensions = array<i32: 1>} : vector<144x18xi32>
    %cst_38 = arith.constant 0.000000e+00 : f32
    %58 = vector.broadcast %cst_38 : f32 to vector<144x18xf32>
    %59 = arith.maximumf %56, %58 : vector<144x18xf32>
    %60 = math.absf %56 : vector<144x18xf32>
    %cst_39 = arith.constant 0.000000e+00 : f32
    %61 = vector.broadcast %cst_39 : f32 to vector<144x18xf32>
    %62 = arith.subf %61, %60 : vector<144x18xf32>
    %63 = math.exp %62 : vector<144x18xf32>
    %64 = math.log1p %63 : vector<144x18xf32>
    %65 = arith.addf %59, %64 : vector<144x18xf32>
    %cst_40 = arith.constant 0.000000e+00 : f32
    %66 = vector.broadcast %cst_40 : f32 to vector<144x18xf32>
    %67 = arith.subf %66, %56 : vector<144x18xf32>
    %68 = math.exp %67 : vector<144x18xf32>
    %cst_41 = arith.constant 1.000000e+00 : f32
    %69 = vector.broadcast %cst_41 : f32 to vector<144x18xf32>
    %70 = arith.addf %69, %68 : vector<144x18xf32>
    %cst_42 = arith.constant 1.000000e+00 : f32
    %71 = vector.broadcast %cst_42 : f32 to vector<144x18xf32>
    %72 = arith.divf %71, %70 : vector<144x18xf32>
    %c3_i32 = arith.constant 3 : i32
    %73 = vector.broadcast %c3_i32 : i32 to vector<144x18xi32>
    %74 = arith.cmpi sge, %57, %73 : vector<144x18xi32>
    %c9_i32 = arith.constant 9 : i32
    %75 = vector.broadcast %c9_i32 : i32 to vector<144x18xi32>
    %76 = arith.cmpi slt, %57, %75 : vector<144x18xi32>
    %77 = arith.andi %74, %76 : vector<144x18xi1>
    %c9_i32_43 = arith.constant 9 : i32
    %78 = vector.broadcast %c9_i32_43 : i32 to vector<144x18xi32>
    %79 = arith.cmpi eq, %57, %78 : vector<144x18xi32>
    %80 = arith.select %79, %72, %56 : vector<144x18xi1>, vector<144x18xf32>
    %81 = arith.select %77, %65, %80 : vector<144x18xi1>, vector<144x18xf32>
    %c0_44 = arith.constant 0 : index
    %c0_45 = arith.constant 0 : index
    %c0_46 = arith.constant 0 : index
    %c0_47 = arith.constant 0 : index
    %82 = vector.load %arg7[%c0_44, %c0_45, %c0_46, %c0_47] : memref<1x1x144x18xf32, #tpu.memory_space<vmem>>, vector<1x1x144x18xf32>
    %83 = vector.shape_cast %82 : vector<1x1x144x18xf32> to vector<144x18xf32>
    %84 = vector.shape_cast %81 : vector<144x18xf32> to vector<1x1x144x18xf32>
    tpu.vector_store %arg7[%c0_44, %c0_45, %c0_46, %c0_47], %84 {strides = array<i32>} : memref<1x1x144x18xf32, #tpu.memory_space<vmem>>, vector<1x1x144x18xf32>,
    %85 = arith.truncf %51 : vector<144x32xf32> to vector<144x32xbf16>
    %c0_48 = arith.constant 0 : index
    %c0_49 = arith.constant 0 : index
    %c0_50 = arith.constant 0 : index
    %c0_51 = arith.constant 0 : index
    %86 = vector.load %arg8[%c0_48, %c0_49, %c0_50, %c0_51] : memref<1x1x144x32xbf16, #tpu.memory_space<vmem>>, vector<1x1x144x32xbf16>
    %87 = vector.shape_cast %86 : vector<1x1x144x32xbf16> to vector<144x32xbf16>
    %88 = vector.shape_cast %85 : vector<144x32xbf16> to vector<1x1x144x32xbf16>
    tpu.vector_store %arg8[%c0_48, %c0_49, %c0_50, %c0_51], %88 {strides = array<i32>} : memref<1x1x144x32xbf16, #tpu.memory_space<vmem>>, vector<1x1x144x32xbf16>,
    return
  }
  func.func @transform_0(%arg0: i32, %arg1: i32) -> (i32, i32, i32, i32) {
    %c0_i32 = arith.constant 0 : i32
    %c0_i32_0 = arith.constant 0 : i32
    %c0_i32_1 = arith.constant 0 : i32
    return %arg0, %arg1, %c0_i32, %c0_i32_0 : i32, i32, i32, i32
  }
  func.func @transform_1(%arg0: i32, %arg1: i32) -> (i32, i32, i32) {
    %c0_i32 = arith.constant 0 : i32
    %c0_i32_0 = arith.constant 0 : i32
    %c0_i32_1 = arith.constant 0 : i32
    %c0_i32_2 = arith.constant 0 : i32
    return %c0_i32, %c0_i32_0, %c0_i32_1 : i32, i32, i32
  }
  func.func @transform_2(%arg0: i32, %arg1: i32) -> (i32, i32) {
    %c0_i32 = arith.constant 0 : i32
    %c0_i32_0 = arith.constant 0 : i32
    %c0_i32_1 = arith.constant 0 : i32
    return %c0_i32, %c0_i32_0 : i32, i32
  }
  func.func @transform_3(%arg0: i32, %arg1: i32) -> (i32, i32) {
    %c0_i32 = arith.constant 0 : i32
    %c0_i32_0 = arith.constant 0 : i32
    %c0_i32_1 = arith.constant 0 : i32
    return %c0_i32, %c0_i32_0 : i32, i32
  }
  func.func @transform_4(%arg0: i32, %arg1: i32) -> (i32, i32) {
    %c0_i32 = arith.constant 0 : i32
    %c0_i32_0 = arith.constant 0 : i32
    %c0_i32_1 = arith.constant 0 : i32
    return %c0_i32, %c0_i32_0 : i32, i32
  }
  func.func @transform_5(%arg0: i32, %arg1: i32) -> (i32, i32, i32, i32) {
    %c0_i32 = arith.constant 0 : i32
    %c0_i32_0 = arith.constant 0 : i32
    %c0_i32_1 = arith.constant 0 : i32
    return %arg0, %arg1, %c0_i32, %c0_i32_0 : i32, i32, i32, i32
  }
  func.func @transform_6(%arg0: i32, %arg1: i32) -> (i32, i32, i32, i32) {
    %c0_i32 = arith.constant 0 : i32
    %c0_i32_0 = arith.constant 0 : i32
    %c0_i32_1 = arith.constant 0 : i32
    return %arg0, %arg1, %c0_i32, %c0_i32_0 : i32, i32, i32, i32
  }
}

</mosaic_0001>

<bundles_post_ra>
// kernel: skeleton_splatter_forward.1
= control target key start
LH: loop header
LB: loop body
LE: loop exit
PB: predicated region body
PF: predicated region fallthrough
CT: control target
= control target key end

     0   :  { %s4587_s21 = smov 0   ;;  %s4589_s22 = smov 0   ;;  %s5977_s0 = inlined_call_operand.vmem [shape: bf16[2,2,184,4], index: 0, kind: input, shape index: {}]   ;;  %s5978_s1 = inlined_call_operand.vmem [shape: f32[9,4,32], index: 1, kind: input, shape index: {}]   ;;  %s5979_s2 = inlined_call_operand.vmem [shape: f32[1,32], index: 2, kind: input, shape index: {}]   ;;  %s5980_s3 = inlined_call_operand.vmem [shape: f32[32,18], index: 3, kind: input, shape index: {}]   ;;  %s5981_s4 = inlined_call_operand.vmem [shape: f32[1,18], index: 4, kind: input, shape index: {}]   ;;  %s5982_s5 = inlined_call_operand.vmem [shape: f32[2,2,144,18], index: 5, kind: output, shape index: {0}]   ;;  %s5983_s6 = inlined_call_operand.vmem [shape: bf16[2,2,144,32], index: 6, kind: output, shape index: {1}]  }
   0x1   :  { %s4591_s23 = smov 0   ;;  %s4593_s24 = smov 0  }
   0x2   :  { %s4595_s25 = smov 0  }
   0x3 LB: > { %s26_s26 = sadd.s32 1, %s4542_s23  ;;  %s29_s27 = sadd.s32 1, %s4546_s24  ;;  %s4550_s25 = sphi %s4595_s25, %s17_s25   ;;  %s4546_s24 = sphi %s4593_s24, %s6069_s24   ;;  %s4542_s23 = sphi %s4591_s23, %s6068_s23   ;;  %s4538_s22 = sphi %s4589_s22, %s6067_s22   ;;  %s4534_s21 = sphi %s4587_s21, %s6066_s21  }
   0x4   : > { %p27_p0 = scmp.ge.s32.totalorder %s26_s26, 2  ;;  %p3388_p1 = scmp.ge.s32.totalorder %s4550_s25, 1 }
   0x5   : > { %p237_p2 = scmp.lt.s32.totalorder %s4550_s25, 5 }
   0x6   : > { %s6071_s26 = smov (%p27_p0, %s26_s26), 0  ;;  %s6073_s27 = smov (!%p27_p0, %s29_s27), %s4546_s24 }
   0x7   : > { %p238_p3 = pnand %p3388_p1, %p237_p2  ;;  %p31_p4 = scmp.ge.s32.totalorder %s6073_s27, 2 }
   0x9   : > { %s6075_s27 = smov (%p31_p4, %s6073_s27), 0  ;;  %241 = sbr.rel (%p238_p3) target bundleno = 736 (0x2e0), region = 40 }
  0x10   : > { %vm454_vm0 = vcmask 1043456   ;;  %v3471_v0 = vld [vmem:[%s5978_s1 + $0x10] sm:$0xf]  ;;  %v3392_v1 = vld [vmem:[%s5978_s1 + $0x4] sm:$0xf]  ;;  %p284_p5 = scmp.lt.s32.totalorder %s4538_s22, 1 }
  0x11   : > { %3992 = vmatprep.subr.msk.mxu0 %vm454_vm0, %v3471_v0  ;;  %3876 = vmatprep.subr.msk.mxu1 %vm454_vm0, %v3392_v1  ;;  %p286_p6 = scmp.lt.s32.totalorder %s4534_s21, 1  ;;  %v3491_v2 = vld [vmem:[%s5978_s1 + $0x14] sm:$0xf]  ;;  %v4633_v3 = vld [vmem:[%s5978_s1] sm:$0xf]  ;;  %vm379_vm1 = vcmask 1046528  }
  0x12   : > { %3993 = vmatpush3.msk.msra.mxu0 %vm454_vm0, %v3471_v0  ;;  %3877 = vmatpush3.msk.msra.mxu1 %vm454_vm0, %v3392_v1  ;;  %s6077_s22 = smov (!%p284_p5, %s4538_s22), 1  ;;  %vm417_vm2 = vcmask 31744   ;;  %vm1249_vm3 = vcmask 1044480   ;;  %v4694_v38 = vld [vmem:[%s5978_s1 + $0x18] sm:$0xf]  ;;  %vm809_vm4 = vcmask 1045504  }
  0x13   : > { %s6079_s21 = smov (!%p286_p6, %s4534_s21), 1  ;;  %4021 = vmatprep.subr.msk.mxu0 %vm454_vm0, %v3491_v2  ;;  %3905 = vmatprep.subr.msk.mxu1 %vm454_vm0, %v4633_v3  ;;  %s4325_s12 = smul.u32 46, %s6077_s22  ;;  %v4699_v39 = vld [vmem:[%s5978_s1 + $0x8] sm:$0xf]  ;;  %vm1940_vm5 = vcmask 1042432   ;;  %vm2192_vm6 = vcmask 1041408  }
  0x14   : > { %s4324_s13 = smul.u32 23, %s6079_s21  ;;  %vm2496_vm7 = vcmask 261120   ;;  %vm3217_vm8 = vcmask 257024   ;;  %vm3126_vm13 = vcmask 146432  }
  0x15   : > { %s4326_s14 = smul.u32 18, %s6079_s21 }
  0x16   : > { %s290_s15 = sadd.s32 %s4325_s12, %s4324_s13  ;;  %s4327_s16 = smul.u32 36, %s6077_s22 }
  0x17   : > { %s3389_s17 = sshll.u32 %s290_s15, 2 }
  0x18   : > { %s4641_s20 = scalar_lea.vmem %s5977_s0, %s3389_s17  ;;  %s4643_s28 = sadd.s32 %s4327_s16, %s4326_s14 }
  0x19   : > { %v3630_v4 = vld [vmem:[%s4641_s20] sm:$0xff]   ;;  %v3673_v5 = vld [vmem:[%s4641_s20 + $0x8] sm:$0xff]   ;;  %v3674_v6 = vld [vmem:[%s4641_s20 + $0x10] sm:$0xff]   ;;  %s3391_s29 = sshll.u32 %s4643_s28, 2  ;;  %s3390_s11 = sshll.u32 %s4643_s28, 3 }
  0x1a   : > { %v4648_v7 = vunpack.c.l.bf16 %v3630_v4  ;;  %v4650_v8 = vunpack.c.h.bf16 %v3630_v4  ;;  %v4652_v9 = vunpack.c.l.bf16 %v3673_v5  ;;  %v4654_v10 = vunpack.c.h.bf16 %v3673_v5  ;;  %v3675_v11 = vld [vmem:[%s4641_s20 + $0x18] sm:$0xff]   ;;  %v3676_v28 = vld [vmem:[%s4641_s20 + $0x20] sm:$0xff]   ;;  %v3677_v33 = vld [vmem:[%s4641_s20 + $0x28] sm:$0xff]   ;;  %s5462_s8 = scalar_lea.vmem %s5983_s6, %s3391_s29  ;;  %s5665_s13 = scalar_lea.vmem %s5982_s5, %s3390_s11 }
  0x1b   : > { %v4657_v12 = vunpack.c.l.bf16 %v3674_v6  ;;  %v4659_v13 = vunpack.c.h.bf16 %v3674_v6  ;;  %v4661_v14 = vunpack.c.l.bf16 %v3675_v11  ;;  %v4663_v15 = vunpack.c.h.bf16 %v3675_v11  ;;  %v3678_v48 = vld [vmem:[%s4641_s20 + $0x30] sm:$0xff]   ;;  %v3679_v57 = vld [vmem:[%s4641_s20 + $0x38] sm:$0xff]   ;;  %v3680_v58 = vld [vmem:[%s4641_s20 + $0x40] sm:$0xff]  }
  0x1c   : > { %v380_v16 = vrot.slane %v4648_v7, 1  ;;  %v381_v17 = vrot.slane %v4650_v8, 1  ;;  %v1250_v18 = vrot.slane %v4652_v9, 3  ;;  %v1251_v19 = vrot.slane %v4654_v10, 3 }
  0x1d   : > { %v383_v20 = vrot.slane %v4652_v9, 1  ;;  %v1253_v21 = vrot.slane %v4657_v12, 3  ;;  %v385_v22 = vrot.slane %v4654_v10, 1  ;;  %v1255_v23 = vrot.slane %v4659_v13, 3 }
  0x1e   : > { %v382_v24 = vsel %vm379_vm1, %v380_v16, %v381_v17  ;;  %v1252_v25 = vsel %vm1249_vm3, %v1250_v18, %v1251_v19  ;;  %v387_v26 = vrot.slane %v4657_v12, 1  ;;  %v1257_v27 = vrot.slane %v4661_v14, 3 }
  0x1f   : > { %3878 = vmatprep.mubr.msk.f32.mxu1 %vm417_vm2, %v382_v24  ;;  %3994 = vmatprep.mubr.msk.f32.mxu0 %vm417_vm2, %v1252_v25  ;;  %v384_v29 = vsel %vm379_vm1, %v381_v17, %v383_v20  ;;  %v1254_v30 = vsel %vm1249_vm3, %v1251_v19, %v1253_v21  ;;  %v386_v31 = vsel %vm379_vm1, %v383_v20, %v385_v22  ;;  %v389_v32 = vrot.slane %v4659_v13, 1  ;;  %v3681_v19 = vld [vmem:[%s4641_s20 + $0x48] sm:$0xff]   ;;  %v4768_v24 = vld [vmem:[%s4641_s20 + $0x50] sm:$0xff]  }
  0x20   : > { %3879 = vmatmul.mubr.msk.f32.vlgmr.msra.gmra.mrb[0].mxu1 %vm417_vm2, %v384_v29  ;;  %3995 = vmatmul.mubr.msk.f32.vlgmr.msra.gmra.mrb[0].mxu0 %vm417_vm2, %v1254_v30  ;;  %v1256_v34 = vsel %vm1249_vm3, %v1253_v21, %v1255_v23  ;;  %v388_v35 = vsel %vm379_vm1, %v385_v22, %v387_v26  ;;  %v1258_v36 = vsel %vm1249_vm3, %v1255_v23, %v1257_v27  ;;  %v1259_v37 = vrot.slane %v4663_v15, 3 }
  0x21   : > { %4022 = vmatpush3.msk.msra.mxu0 %vm454_vm0, %v3491_v2  ;;  %3881 = vmatprep.mubr.msk.f32.mxu1 %vm417_vm2, %v386_v31  ;;  %v390_v40 = vsel %vm379_vm1, %v387_v26, %v389_v32  ;;  %v391_v41 = vrot.slane %v4661_v14, 1  ;;  %v4705_v42 = vunpack.c.l.bf16 %v3676_v28  ;;  %v393_v43 = vrot.slane %v4663_v15, 1 }
  0x22   : > { %3997 = vmatprep.mubr.msk.f32.mxu0 %vm417_vm2, %v1256_v34  ;;  %v1260_v44 = vsel %vm1249_vm3, %v1257_v27, %v1259_v37  ;;  %v4710_v45 = vunpack.c.h.bf16 %v3676_v28  ;;  %v4712_v46 = vunpack.c.l.bf16 %v3677_v33  ;;  %v4714_v47 = vunpack.c.h.bf16 %v3677_v33  ;;  %3906 = vmatpush3.msk.msra.mxu1 %vm454_vm0, %v4633_v3 }
  0x23   : > { %v1261_v49 = vrot.slane %v4705_v42, 3  ;;  %4050 = vmatprep.subr.msk.mxu0 %vm454_vm0, %v4694_v38  ;;  %3934 = vmatprep.subr.msk.mxu1 %vm454_vm0, %v4699_v39  ;;  %v392_v50 = vsel %vm379_vm1, %v389_v32, %v391_v41  ;;  %v394_v51 = vsel %vm379_vm1, %v391_v41, %v393_v43  ;;  %v395_v54 = vrot.slane %v4705_v42, 1 }
  0x24   : > { %3882 = vmatmul.mubr.msk.f32.gmra.mrb[2].mxu1 %vm417_vm2, %v388_v35  ;;  %3998 = vmatmul.mubr.msk.f32.gmra.mrb[2].mxu0 %vm417_vm2, %v1258_v36  ;;  %v1263_v52 = vrot.slane %v4710_v45, 3  ;;  %v1265_v55 = vrot.slane %v4712_v46, 3  ;;  %v4734_v56 = vunpack.c.l.bf16 %v3678_v48  ;;  %v397_v60 = vrot.slane %v4710_v45, 1 }
  0x25   : > { %3884 = vmatprep.mubr.msk.f32.mxu1 %vm417_vm2, %v390_v40  ;;  %4000 = vmatprep.mubr.msk.f32.mxu0 %vm417_vm2, %v1260_v44  ;;  %v1262_v53 = vsel %vm1249_vm3, %v1259_v37, %v1261_v49  ;;  %v1267_v61 = vrot.slane %v4714_v47, 3  ;;  %v399_v62 = vrot.slane %v4712_v46, 1  ;;  %v4743_v0 = vunpack.c.h.bf16 %v3678_v48 }
  0x26   : > { %v1264_v59 = vsel %vm1249_vm3, %v1261_v49, %v1263_v52  ;;  %v1269_v63 = vrot.slane %v4734_v56, 3  ;;  %v4747_v1 = vunpack.c.l.bf16 %v3679_v57  ;;  %v4749_v2 = vunpack.c.h.bf16 %v3679_v57 }
  0x27   : > { %v4751_v3 = vunpack.c.l.bf16 %v3680_v58  ;;  %v396_v4 = vsel %vm379_vm1, %v393_v43, %v395_v54  ;;  %v1266_v5 = vsel %vm1249_vm3, %v1263_v52, %v1265_v55  ;;  %v401_v6 = vrot.slane %v4714_v47, 1 }
  0x28   : > { %3885 = vmatmul.mubr.msk.f32.gmra.mrb[4].mxu1 %vm417_vm2, %v392_v50  ;;  %4001 = vmatmul.mubr.msk.f32.gmra.mrb[4].mxu0 %vm417_vm2, %v1262_v53  ;;  %v398_v11 = vsel %vm379_vm1, %v395_v54, %v397_v60  ;;  %v1268_v16 = vsel %vm1249_vm3, %v1265_v55, %v1267_v61  ;;  %v400_v17 = vsel %vm379_vm1, %v397_v60, %v399_v62  ;;  %v1271_v18 = vrot.slane %v4743_v0, 3 }
  0x29   : > { %3887 = vmatprep.mubr.msk.f32.mxu1 %vm417_vm2, %v394_v51  ;;  %4003 = vmatprep.mubr.msk.f32.mxu0 %vm417_vm2, %v1264_v59  ;;  %v1270_v20 = vsel %vm1249_vm3, %v1267_v61, %v1269_v63  ;;  %v403_v21 = vrot.slane %v4734_v56, 1  ;;  %v1273_v22 = vrot.slane %v4747_v1, 3  ;;  %v405_v23 = vrot.slane %v4743_v0, 1 }
  0x2a   : > { %v1275_v25 = vrot.slane %v4749_v2, 3  ;;  %v407_v26 = vrot.slane %v4747_v1, 1  ;;  %v1277_v27 = vrot.slane %v4751_v3, 3  ;;  %v4775_v28 = vunpack.c.h.bf16 %v3680_v58 }
  0x2b   : > { %v402_v29 = vsel %vm379_vm1, %v399_v62, %v401_v6  ;;  %v409_v30 = vrot.slane %v4749_v2, 1  ;;  %v411_v31 = vrot.slane %v4751_v3, 1  ;;  %v4782_v32 = vunpack.c.l.bf16 %v3681_v19 }
  0x2c   : > { %3888 = vmatmul.mubr.msk.f32.gmra.mrb[6].mxu1 %vm417_vm2, %v396_v4  ;;  %4004 = vmatmul.mubr.msk.f32.gmra.mrb[6].mxu0 %vm417_vm2, %v1266_v5  ;;  %v1272_v33 = vsel %vm1249_vm3, %v1269_v63, %v1271_v18  ;;  %v1279_v34 = vrot.slane %v4775_v28, 3  ;;  %v4786_v35 = vunpack.c.h.bf16 %v3681_v19  ;;  %v4789_v36 = vunpack.c.l.bf16 %v4768_v24 }
  0x2d   : > { %3890 = vmatprep.mubr.msk.f32.mxu1 %vm417_vm2, %v398_v11  ;;  %4006 = vmatprep.mubr.msk.f32.mxu0 %vm417_vm2, %v1268_v16  ;;  %v404_v37 = vsel %vm379_vm1, %v401_v6, %v403_v21  ;;  %v1274_v40 = vsel %vm1249_vm3, %v1271_v18, %v1273_v22  ;;  %v406_v41 = vsel %vm379_vm1, %v403_v21, %v405_v23  ;;  %v413_v43 = vrot.slane %v4775_v28, 1 }
  0x2e   : > { %v1276_v44 = vsel %vm1249_vm3, %v1273_v22, %v1275_v25  ;;  %v408_v48 = vsel %vm379_vm1, %v405_v23, %v407_v26  ;;  %v1278_v49 = vsel %vm1249_vm3, %v1275_v25, %v1277_v27  ;;  %v1281_v50 = vrot.slane %v4782_v32, 3 }
  0x2f   : > { %v410_v51 = vsel %vm379_vm1, %v407_v26, %v409_v30  ;;  %v412_v52 = vsel %vm379_vm1, %v409_v30, %v411_v31  ;;  %v415_v53 = vrot.slane %v4782_v32, 1  ;;  %v1501_v54 = vrot.slane %v4652_v9, 4 }
  0x30   : > { %3891 = vmatmul.mubr.msk.f32.gmra.mrb[8].mxu1 %vm417_vm2, %v400_v17  ;;  %4007 = vmatmul.mubr.msk.f32.gmra.mrb[8].mxu0 %vm417_vm2, %v1270_v20  ;;  %v1280_v55 = vsel %vm1249_vm3, %v1277_v27, %v1279_v34  ;;  %v1283_v57 = vrot.slane %v4786_v35, 3  ;;  %v1285_v58 = vrot.slane %v4789_v36, 3  ;;  %v1502_v59 = vrot.slane %v4654_v10, 4 }
  0x31   : > { %3893 = vmatprep.mubr.msk.f32.mxu1 %vm417_vm2, %v402_v29  ;;  %4009 = vmatprep.mubr.msk.f32.mxu0 %vm417_vm2, %v1272_v33  ;;  %v414_v60 = vsel %vm379_vm1, %v411_v31, %v413_v43  ;;  %v1504_v61 = vrot.slane %v4657_v12, 4  ;;  %v1506_v62 = vrot.slane %v4659_v13, 4  ;;  %v1508_v63 = vrot.slane %v4661_v14, 4 }
  0x32   : > { %v1282_v4 = vsel %vm1249_vm3, %v1279_v34, %v1281_v50  ;;  %v1510_v5 = vrot.slane %v4663_v15, 4  ;;  %v1512_v6 = vrot.slane %v4705_v42, 4  ;;  %v1514_v11 = vrot.slane %v4710_v45, 4 }
  0x33   : > { %v416_v16 = vsel %vm379_vm1, %v413_v43, %v415_v53  ;;  %v1516_v17 = vrot.slane %v4712_v46, 4  ;;  %v1518_v18 = vrot.slane %v4714_v47, 4  ;;  %v1520_v19 = vrot.slane %v4734_v56, 4 }
  0x34   : > { %3894 = vmatmul.mubr.msk.f32.gmra.mrb[10].mxu1 %vm417_vm2, %v404_v37  ;;  %4010 = vmatmul.mubr.msk.f32.gmra.mrb[10].mxu0 %vm417_vm2, %v1274_v40  ;;  %v1284_v20 = vsel %vm1249_vm3, %v1281_v50, %v1283_v57  ;;  %v1286_v21 = vsel %vm1249_vm3, %v1283_v57, %v1285_v58  ;;  %v1503_v22 = vsel %vm454_vm0, %v1501_v54, %v1502_v59  ;;  %v1522_v23 = vrot.slane %v4743_v0, 4 }
  0x35   : > { %3896 = vmatprep.mubr.msk.f32.mxu1 %vm417_vm2, %v406_v41  ;;  %4012 = vmatprep.mubr.msk.f32.mxu0 %vm417_vm2, %v1276_v44  ;;  %v4832_v25 = vsel %vm454_vm0, %v1502_v59, %v1504_v61  ;;  %v4835_v26 = vsel %vm454_vm0, %v1504_v61, %v1506_v62  ;;  %v4838_v27 = vsel %vm454_vm0, %v1506_v62, %v1508_v63  ;;  %v1524_v29 = vrot.slane %v4747_v1, 4 }
  0x36   : > { %v4844_v30 = vsel %vm454_vm0, %v1508_v63, %v1510_v5  ;;  %v4847_v31 = vsel %vm454_vm0, %v1510_v5, %v1512_v6  ;;  %v4850_v33 = vsel %vm454_vm0, %v1512_v6, %v1514_v11  ;;  %v4855_v34 = vsel %vm454_vm0, %v1514_v11, %v1516_v17 }
  0x37   : > { %v4858_v37 = vsel %vm454_vm0, %v1516_v17, %v1518_v18  ;;  %v4861_v40 = vsel %vm454_vm0, %v1518_v18, %v1520_v19  ;;  %v5985_v41 = vrot.slane %v4749_v2, 4  ;;  %v4865_v43 = vsel %vm454_vm0, %v1520_v19, %v1522_v23 }
  0x38   : > { %3897 = vmatmul.mubr.msk.f32.gmra.mrb[12].mxu1 %vm417_vm2, %v408_v48  ;;  %4013 = vmatmul.mubr.msk.f32.gmra.mrb[12].mxu0 %vm417_vm2, %v1278_v49  ;;  %v810_v48 = vrot.slane %v4648_v7, 2  ;;  %v811_v49 = vrot.slane %v4650_v8, 2  ;;  %v4873_v50 = vsel %vm454_vm0, %v1522_v23, %v1524_v29  ;;  %v813_v53 = vrot.slane %v4652_v9, 2 }
  0x39   : > { %3899 = vmatprep.mubr.msk.f32.mxu1 %vm417_vm2, %v410_v51  ;;  %4015 = vmatprep.mubr.msk.f32.mxu0 %vm417_vm2, %v1280_v55  ;;  %v815_v54 = vrot.slane %v4654_v10, 2  ;;  %v817_v57 = vrot.slane %v4657_v12, 2  ;;  %v819_v58 = vrot.slane %v4659_v13, 2  ;;  %v821_v59 = vrot.slane %v4661_v14, 2 }
  0x3a   : > { %v4881_v55 = vsel %vm809_vm4, %v810_v48, %v811_v49  ;;  %v4889_v61 = vsel %vm809_vm4, %v811_v49, %v813_v53  ;;  %v823_v62 = vrot.slane %v4663_v15, 2  ;;  %v825_v63 = vrot.slane %v4705_v42, 2 }
  0x3b   : > { %v4900_v5 = vsel %vm809_vm4, %v817_v57, %v819_v58  ;;  %v827_v6 = vrot.slane %v4710_v45, 2  ;;  %v829_v18 = vrot.slane %v4712_v46, 2  ;;  %v831_v19 = vrot.slane %v4714_v47, 2 }
  0x3c   : > { %3900 = vmatmul.mubr.msk.f32.gmra.mrb[14].mxu1 %vm417_vm2, %v412_v52  ;;  %4016 = vmatmul.mubr.msk.f32.gmra.mrb[14].mxu0 %vm417_vm2, %v1282_v4  ;;  %v4892_v52 = vsel %vm809_vm4, %v813_v53, %v815_v54  ;;  %v4897_v4 = vsel %vm809_vm4, %v815_v54, %v817_v57  ;;  %v4907_v11 = vsel %vm809_vm4, %v821_v59, %v823_v62  ;;  %v833_v23 = vrot.slane %v4734_v56, 2  ;;  %v333_v57 = vld [vmem:[%s4641_s20 + $0x58] sm:$0xf] }
  0x3d   : > { %3902 = vmatprep.mubr.msk.f32.mxu1 %vm417_vm2, %v414_v60  ;;  %4018 = vmatprep.mubr.msk.f32.mxu0 %vm417_vm2, %v1284_v20  ;;  %v4903_v60 = vsel %vm809_vm4, %v819_v58, %v821_v59  ;;  %v4910_v17 = vsel %vm809_vm4, %v823_v62, %v825_v63  ;;  %v4917_v20 = vsel %vm809_vm4, %v825_v63, %v827_v6  ;;  %v835_v48 = vrot.slane %v4743_v0, 2 }
  0x3e   : > { %v837_v49 = vrot.slane %v4747_v1, 2  ;;  %v4926_v53 = vsel %vm809_vm4, %v827_v6, %v829_v18  ;;  %v841_v54 = vrot.slane %v4751_v3, 2  ;;  %v4935_v58 = vsel %vm809_vm4, %v831_v19, %v833_v23 }
  0x3f   : > { %v4938_v59 = vsel %vm809_vm4, %v833_v23, %v835_v48  ;;  %v4951_v6 = vunpack.c.h.bf16 %v4768_v24  ;;  %v4971_v24 = vld [vmem:[%s5978_s1 + $0xc] sm:$0xf]  ;;  %v1948_v51 = vrot.slane %v4705_v42, 5  ;;  %v5002_v44 = vsel %vm454_vm0, %v1524_v29, %v5985_v41 }
  0x40   : > { %3903 = vmatmul.mubr.msk.f32.gmra.mrb[16].mxu1 %vm417_vm2, %v416_v16  ;;  %4019 = vmatmul.mubr.msk.f32.gmra.mrb[16].mxu0 %vm417_vm2, %v1286_v21  ;;  %v4929_v16 = vsel %vm809_vm4, %v829_v18, %v831_v19  ;;  %v839_v21 = vrot.slane %v4749_v2, 2  ;;  %v5984_v18 = vrot.slane %v4782_v32, 2  ;;  %v4961_v19 = vld [vmem:[%s5978_s1 + $0x1c] sm:$0xf] }
  0x41   : > { %3907 = vmatprep.mubr.msk.f32.mxu1 %vm417_vm2, %v4648_v7  ;;  %4023 = vmatprep.mubr.msk.f32.mxu0 %vm417_vm2, %v1503_v22  ;;  %v4941_v7 = vsel %vm809_vm4, %v835_v48, %v837_v49  ;;  %v843_v22 = vrot.slane %v4775_v28, 2  ;;  %v4966_v48 = vunpack.c.l.bf16 %v333_v57  ;;  %v1946_v57 = vrot.slane %v4663_v15, 5 }
  0x42   : > { %v4945_v62 = vsel %vm809_vm4, %v837_v49, %v839_v21  ;;  %v4948_v63 = vsel %vm809_vm4, %v839_v21, %v841_v54  ;;  %v1942_v49 = vrot.slane %v4659_v13, 5 }
  0x43   : > { %v4964_v23 = vsel %vm809_vm4, %v841_v54, %v843_v22  ;;  %v4983_v21 = vsel %vm809_vm4, %v843_v22, %v5984_v18  ;;  %v1944_v54 = vrot.slane %v4661_v14, 5  ;;  %v1950_v22 = vrot.slane %v4710_v45, 5 }
  0x44   : > { %3908 = vmatmul.mubr.msk.f32.vlgmr.msra.gmra.mrb[0].mxu1 %vm417_vm2, %v4650_v8  ;;  %4024 = vmatmul.mubr.msk.f32.vlgmr.msra.gmra.mrb[0].mxu0 %vm417_vm2, %v4832_v25  ;;  %v1941_v8 = vrot.slane %v4657_v12, 5  ;;  %v5986_v25 = vrot.slane %v4951_v6, 4  ;;  %v1952_v18 = vrot.slane %v4712_v46, 5  ;;  %v5025_v41 = vsel %vm1940_vm5, %v1946_v57, %v1948_v51 }
  0x45   : > { %4051 = vmatpush3.msk.msra.mxu0 %vm454_vm0, %v4694_v38  ;;  %3910 = vmatprep.mubr.msk.f32.mxu1 %vm417_vm2, %v4652_v9  ;;  %v1756_v38 = vrot.slane %v4966_v48, 4  ;;  %5990 = vst [vmem:[#allocation5_spill] sm:$0xff] %v5025_v41  ;;  %v1964_v41 = vrot.slane %v4751_v3, 5 }
  0x46   : > { %4026 = vmatprep.mubr.msk.f32.mxu0 %vm417_vm2, %v4835_v26  ;;  %3935 = vmatpush3.msk.msra.mxu1 %vm454_vm0, %v4699_v39  ;;  %v4993_v9 = vsel %vm1940_vm5, %v1941_v8, %v1942_v49  ;;  %v5009_v39 = vsel %vm1940_vm5, %v1942_v49, %v1944_v54  ;;  %v5012_v8 = vsel %vm1940_vm5, %v1944_v54, %v1946_v57  ;;  %v1954_v54 = vrot.slane %v4714_v47, 5 }
  0x47   : > { %5987 = vst [vmem:[#allocation2_spill] sm:$0xff] %v4993_v9  ;;  %4079 = vmatprep.subr.msk.mxu0 %vm454_vm0, %v4961_v19  ;;  %3963 = vmatprep.subr.msk.mxu1 %vm454_vm0, %v4971_v24  ;;  %5988 = vst [vmem:[#allocation3_spill] sm:$0xff] %v5009_v39  ;;  %v5022_v29 = vsel %vm454_vm0, %v5986_v25, %v1756_v38  ;;  %v5028_v49 = vsel %vm1940_vm5, %v1948_v51, %v1950_v22  ;;  %v1956_v38 = vrot.slane %v4734_v56, 5 }
  0x48   : > { %5989 = vst [vmem:[#allocation4_spill] sm:$0xff] %v5012_v8  ;;  %3911 = vmatmul.mubr.msk.f32.gmra.mrb[2].mxu1 %vm417_vm2, %v4654_v10  ;;  %4027 = vmatmul.mubr.msk.f32.gmra.mrb[2].mxu0 %vm417_vm2, %v4838_v27  ;;  %5991 = vst [vmem:[#allocation6_spill] sm:$0xff] %v5028_v49  ;;  %v5036_v10 = vsel %vm1940_vm5, %v1950_v22, %v1952_v18  ;;  %v1958_v25 = vrot.slane %v4743_v0, 5  ;;  %v1960_v57 = vrot.slane %v4747_v1, 5  ;;  %v1962_v49 = vrot.slane %v4749_v2, 5 }
  0x49   : > { %3913 = vmatprep.mubr.msk.f32.mxu1 %vm417_vm2, %v4657_v12  ;;  %4029 = vmatprep.mubr.msk.f32.mxu0 %vm417_vm2, %v4844_v30  ;;  %5992 = vst [vmem:[#allocation7_spill] sm:$0xff] %v5036_v10  ;;  %v5042_v51 = vsel %vm1940_vm5, %v1952_v18, %v1954_v54  ;;  %v1966_v8 = vrot.slane %v4775_v28, 5  ;;  %v5048_v39 = vsel %vm1940_vm5, %v1954_v54, %v1956_v38  ;;  %v1968_v9 = vrot.slane %v4782_v32, 5 }
  0x4a   : > { %5993 = vst [vmem:[#allocation8_spill] sm:$0xff] %v5042_v51  ;;  %5994 = vst [vmem:[#allocation9_spill] sm:$0xff] %v5048_v39  ;;  %v5051_v22 = vsel %vm1940_vm5, %v1956_v38, %v1958_v25  ;;  %v5054_v10 = vsel %vm1940_vm5, %v1958_v25, %v1960_v57  ;;  %v5062_v18 = vsel %vm1940_vm5, %v1960_v57, %v1962_v49  ;;  %v1970_v25 = vrot.slane %v4786_v35, 5 }
  0x4b   : > { %5995 = vst [vmem:[#allocation10_spill] sm:$0xff] %v5051_v22  ;;  %5996 = vst [vmem:[#allocation11_spill] sm:$0xff] %v5054_v10  ;;  %v5065_v54 = vsel %vm1940_vm5, %v1962_v49, %v1964_v41  ;;  %v5068_v38 = vsel %vm1940_vm5, %v1964_v41, %v1966_v8  ;;  %v5076_v10 = vsel %vm1940_vm5, %v1966_v8, %v1968_v9  ;;  %v1972_v57 = vrot.slane %v4789_v36, 5 }
  0x4c   : > { %3914 = vmatmul.mubr.msk.f32.gmra.mrb[4].mxu1 %vm417_vm2, %v4659_v13  ;;  %4030 = vmatmul.mubr.msk.f32.gmra.mrb[4].mxu0 %vm417_vm2, %v4847_v31  ;;  %5997 = vst [vmem:[#allocation12_spill] sm:$0xff] %v5062_v18  ;;  %5998 = vst [vmem:[#allocation13_spill] sm:$0xff] %v5065_v54  ;;  %v1063_v18 = vrot.slane %v4786_v35, 2  ;;  %v1974_v49 = vrot.slane %v4951_v6, 5  ;;  %v5082_v41 = vsel %vm1940_vm5, %v1968_v9, %v1970_v25  ;;  %v1976_v54 = vrot.slane %v4966_v48, 5 }
  0x4d   : > { %5999 = vst [vmem:[#allocation14_spill] sm:$0xff] %v5068_v38  ;;  %3916 = vmatprep.mubr.msk.f32.mxu1 %vm417_vm2, %v4661_v14  ;;  %4032 = vmatprep.mubr.msk.f32.mxu0 %vm417_vm2, %v4850_v33  ;;  %6000 = vst [vmem:[#allocation15_spill] sm:$0xff] %v5076_v10  ;;  %v1065_v38 = vrot.slane %v4789_v36, 2  ;;  %v5087_v22 = vsel %vm1940_vm5, %v1970_v25, %v1972_v57  ;;  %v6001_v8 = vrot.slane %v4782_v32, 2  ;;  %v2193_v51 = vrot.slane %v4657_v12, 6 }
  0x4e   : > { %v5095_v39 = vsel %vm1940_vm5, %v1972_v57, %v1974_v49  ;;  %v5106_v25 = vsel %vm1940_vm5, %v1974_v49, %v1976_v54  ;;  %v2198_v12 = vrot.slane %v4663_v15, 6  ;;  %v2200_v57 = vrot.slane %v4705_v42, 6 }
  0x4f   : > { %v5092_v10 = vsel %vm809_vm4, %v6001_v8, %v1063_v18  ;;  %v5103_v9 = vsel %vm809_vm4, %v1063_v18, %v1065_v38  ;;  %6004 = vst [vmem:[#allocation18_spill] sm:$0xff] %v5106_v25  ;;  %v2194_v8 = vrot.slane %v4659_v13, 6  ;;  %v2202_v18 = vrot.slane %v4710_v45, 6 }
  0x50   : > { %6002 = vst [vmem:[#allocation16_spill] sm:$0xff] %v5092_v10  ;;  %3917 = vmatmul.mubr.msk.f32.gmra.mrb[6].mxu1 %vm417_vm2, %v4663_v15  ;;  %4033 = vmatmul.mubr.msk.f32.gmra.mrb[6].mxu0 %vm417_vm2, %v4855_v34  ;;  %6003 = vst [vmem:[#allocation17_spill] sm:$0xff] %v5103_v9  ;;  %v2196_v10 = vrot.slane %v4661_v14, 6  ;;  %v2204_v38 = vrot.slane %v4712_v46, 6  ;;  %v2206_v14 = vrot.slane %v4714_v47, 6  ;;  %v2208_v49 = vrot.slane %v4734_v56, 6 }
  0x51   : > { %3919 = vmatprep.mubr.msk.f32.mxu1 %vm417_vm2, %v4705_v42  ;;  %4035 = vmatprep.mubr.msk.f32.mxu0 %vm417_vm2, %v4858_v37  ;;  %v5119_v54 = vsel %vm2192_vm6, %v2193_v51, %v2194_v8  ;;  %v5130_v15 = vsel %vm2192_vm6, %v2198_v12, %v2200_v57  ;;  %v5133_v42 = vsel %vm2192_vm6, %v2200_v57, %v2202_v18  ;;  %v2216_v57 = vrot.slane %v4751_v3, 6 }
  0x52   : > { %v5122_v13 = vsel %vm2192_vm6, %v2194_v8, %v2196_v10  ;;  %v5127_v25 = vsel %vm2192_vm6, %v2196_v10, %v2198_v12  ;;  %6006 = vst [vmem:[#allocation20_spill] sm:$0xff] %v5130_v15  ;;  %6007 = vst [vmem:[#allocation21_spill] sm:$0xff] %v5133_v42  ;;  %v5136_v9 = vsel %vm2192_vm6, %v2202_v18, %v2204_v38  ;;  %v2210_v8 = vrot.slane %v4743_v0, 6 }
  0x53   : > { %6005 = vst [vmem:[#allocation19_spill] sm:$0xff] %v5127_v25  ;;  %6008 = vst [vmem:[#allocation22_spill] sm:$0xff] %v5136_v9  ;;  %v5143_v51 = vsel %vm2192_vm6, %v2204_v38, %v2206_v14  ;;  %v5146_v10 = vsel %vm2192_vm6, %v2206_v14, %v2208_v49  ;;  %v2212_v12 = vrot.slane %v4747_v1, 6  ;;  %v2218_v18 = vrot.slane %v4775_v28, 6 }
  0x54   : > { %3920 = vmatmul.mubr.msk.f32.gmra.mrb[8].mxu1 %vm417_vm2, %v4710_v45  ;;  %4036 = vmatmul.mubr.msk.f32.gmra.mrb[8].mxu0 %vm417_vm2, %v4861_v40  ;;  %6009 = vst [vmem:[#allocation23_spill] sm:$0xff] %v5143_v51  ;;  %6010 = vst [vmem:[#allocation24_spill] sm:$0xff] %v5146_v10  ;;  %v2214_v45 = vrot.slane %v4749_v2, 6  ;;  %v2220_v38 = vrot.slane %v4782_v32, 6  ;;  %v5159_v14 = vsel %vm2192_vm6, %v2208_v49, %v2210_v8  ;;  %v2222_v51 = vrot.slane %v4786_v35, 6 }
  0x55   : > { %3922 = vmatprep.mubr.msk.f32.mxu1 %vm417_vm2, %v4712_v46  ;;  %4038 = vmatprep.mubr.msk.f32.mxu0 %vm417_vm2, %v4865_v43  ;;  %v5162_v10 = vsel %vm2192_vm6, %v2210_v8, %v2212_v12  ;;  %v2224_v46 = vrot.slane %v4789_v36, 6  ;;  %v5173_v15 = vsel %vm2192_vm6, %v2216_v57, %v2218_v18 }
  0x56   : > { %v5167_v9 = vsel %vm2192_vm6, %v2212_v12, %v2214_v45  ;;  %v5170_v42 = vsel %vm2192_vm6, %v2214_v45, %v2216_v57  ;;  %v5176_v25 = vsel %vm2192_vm6, %v2218_v18, %v2220_v38  ;;  %v5183_v49 = vsel %vm2192_vm6, %v2220_v38, %v2222_v51 }
  0x57   : > { %6011 = vst [vmem:[#allocation25_spill] sm:$0xff] %v5176_v25  ;;  %6012 = vst [vmem:[#allocation26_spill] sm:$0xff] %v5183_v49  ;;  %v5186_v8 = vsel %vm2192_vm6, %v2222_v51, %v2224_v46  ;;  %v2226_v12 = vrot.slane %v4951_v6, 6  ;;  %v2228_v45 = vrot.slane %v4966_v48, 6  ;;  %v6015_v57 = vrot.slane %v4749_v2, 4 }
  0x58   : > { %3923 = vmatmul.mubr.msk.f32.gmra.mrb[10].mxu1 %vm417_vm2, %v4714_v47  ;;  %4039 = vmatmul.mubr.msk.f32.gmra.mrb[10].mxu0 %vm417_vm2, %v4873_v50  ;;  %6013 = vst [vmem:[#allocation27_spill] sm:$0xff] %v5186_v8  ;;  %v6014_v47 = vrot.slane %v4751_v3, 4  ;;  %v1532_v38 = vrot.slane %v4782_v32, 4  ;;  %v6016_v51 = vrot.slane %v4775_v28, 4  ;;  %v1534_v49 = vrot.slane %v4786_v35, 4 }
  0x59   : > { %3925 = vmatprep.mubr.msk.f32.mxu1 %vm417_vm2, %v4734_v56  ;;  %4041 = vmatprep.mubr.msk.f32.mxu0 %vm417_vm2, %v5002_v44  ;;  %v5207_v56 = vsel %vm2192_vm6, %v2224_v46, %v2226_v12  ;;  %v5210_v25 = vsel %vm2192_vm6, %v2226_v12, %v2228_v45  ;;  %v1536_v46 = vrot.slane %v4789_v36, 4  ;;  %v6021_v36 = vld [vmem:[#allocation3_spill] sm:$0xff] }
  0x5a   : > { %v1529_v18 = vsel %vm454_vm0, %v6015_v57, %v6014_v47  ;;  %v6017_v8 = vmov %v6014_v47  ;;  %v6018_v32 = vmov %v6016_v51 }
  0x5b   : > { %v1531_v48 = vsel %vm454_vm0, %v6017_v8, %v6016_v51  ;;  %v1533_v35 = vsel %vm454_vm0, %v6018_v32, %v1532_v38  ;;  %v1535_v8 = vsel %vm454_vm0, %v1532_v38, %v1534_v49 }
  0x5c   : > { %3926 = vmatmul.mubr.msk.f32.gmra.mrb[12].mxu1 %vm417_vm2, %v4743_v0  ;;  %4042 = vmatmul.mubr.msk.f32.gmra.mrb[12].mxu0 %vm417_vm2, %v1529_v18  ;;  %v1537_v0 = vsel %vm454_vm0, %v1534_v49, %v1536_v46 }
  0x5d   : > { %3928 = vmatprep.mubr.msk.f32.mxu1 %vm417_vm2, %v4747_v1  ;;  %4044 = vmatprep.mubr.msk.f32.mxu0 %vm417_vm2, %v1531_v48  ;;  %v3551_v1 = vld [vmem:[%s5978_s1 + $0x20] sm:$0xf] }
  0x60   : > { %3929 = vmatmul.mubr.msk.f32.gmra.mrb[14].mxu1 %vm417_vm2, %v4749_v2  ;;  %4045 = vmatmul.mubr.msk.f32.gmra.mrb[14].mxu0 %vm417_vm2, %v1533_v35  ;;  %v6019_v2 = vrot.slane %v4951_v6, 4  ;;  %v2487_v6 = vld [vmem:[%s5980_s3 + $0x10] sm:$0xff] }
  0x61   : > { %3931 = vmatprep.mubr.msk.f32.mxu1 %vm417_vm2, %v4751_v3  ;;  %4047 = vmatprep.mubr.msk.f32.mxu0 %vm417_vm2, %v1535_v8 }
  0x62   : > { %v1755_v3 = vsel %vm454_vm0, %v1536_v46, %v6019_v2 }
  0x64   : > { %3932 = vmatmul.mubr.msk.f32.gmra.mrb[16].mxu1 %vm417_vm2, %v4775_v28  ;;  %4048 = vmatmul.mubr.msk.f32.gmra.mrb[16].mxu0 %vm417_vm2, %v1537_v0  ;;  %v6020_v28 = vld [vmem:[#allocation2_spill] sm:$0xff] }
  0x65   : > { %3936 = vmatprep.mubr.msk.f32.mxu1 %vm417_vm2, %v4881_v55  ;;  %4052 = vmatprep.mubr.msk.f32.mxu0 %vm417_vm2, %v4835_v26  ;;  %v6022_v26 = vld [vmem:[#allocation4_spill] sm:$0xff]  ;;  %v6033_v55 = vld [vmem:[#allocation15_spill] sm:$0xff] }
  0x68   : > { %3937 = vmatmul.mubr.msk.f32.vlgmr.msra.gmra.mrb[0].mxu1 %vm417_vm2, %v4889_v61  ;;  %4053 = vmatmul.mubr.msk.f32.vlgmr.msra.gmra.mrb[0].mxu0 %vm417_vm2, %v4838_v27  ;;  %v6023_v27 = vld [vmem:[#allocation5_spill] sm:$0xff]  ;;  %v6034_v61 = vld [vmem:[#allocation16_spill] sm:$0xff] }
  0x69   : > { %4080 = vmatpush3.msk.msra.mxu0 %vm454_vm0, %v4961_v19  ;;  %3939 = vmatprep.mubr.msk.f32.mxu1 %vm417_vm2, %v4892_v52  ;;  %v2488_v19 = vld [vmem:[%s5980_s3 + $0x18] sm:$0xff] }
  0x6a   : > { %4055 = vmatprep.mubr.msk.f32.mxu0 %vm417_vm2, %v4844_v30  ;;  %3964 = vmatpush3.msk.msra.mxu1 %vm454_vm0, %v4971_v24  ;;  %v6024_v30 = vld [vmem:[#allocation6_spill] sm:$0xff] }
  0x6b   : > { %4108 = vmatprep.subr.msk.mxu0 %vm454_vm0, %v3551_v1 }
  0x6c   : > { %3940 = vmatmul.mubr.msk.f32.gmra.mrb[2].mxu1 %vm417_vm2, %v4897_v4  ;;  %4056 = vmatmul.mubr.msk.f32.gmra.mrb[2].mxu0 %vm417_vm2, %v4847_v31  ;;  %v6025_v31 = vld [vmem:[#allocation7_spill] sm:$0xff] }
  0x6d   : > { %3942 = vmatprep.mubr.msk.f32.mxu1 %vm417_vm2, %v4900_v5  ;;  %4058 = vmatprep.mubr.msk.f32.mxu0 %vm417_vm2, %v4850_v33  ;;  %v6026_v33 = vld [vmem:[#allocation8_spill] sm:$0xff] }
  0x70   : > { %3943 = vmatmul.mubr.msk.f32.gmra.mrb[4].mxu1 %vm417_vm2, %v4903_v60  ;;  %4059 = vmatmul.mubr.msk.f32.gmra.mrb[4].mxu0 %vm417_vm2, %v4855_v34  ;;  %v6027_v34 = vld [vmem:[#allocation9_spill] sm:$0xff] }
  0x71   : > { %3945 = vmatprep.mubr.msk.f32.mxu1 %vm417_vm2, %v4907_v11  ;;  %4061 = vmatprep.mubr.msk.f32.mxu0 %vm417_vm2, %v4858_v37  ;;  %v6028_v37 = vld [vmem:[#allocation10_spill] sm:$0xff] }
  0x74   : > { %3946 = vmatmul.mubr.msk.f32.gmra.mrb[6].mxu1 %vm417_vm2, %v4910_v17  ;;  %4062 = vmatmul.mubr.msk.f32.gmra.mrb[6].mxu0 %vm417_vm2, %v4861_v40  ;;  %v6029_v40 = vld [vmem:[#allocation11_spill] sm:$0xff] }
  0x75   : > { %3948 = vmatprep.mubr.msk.f32.mxu1 %vm417_vm2, %v4917_v20  ;;  %4064 = vmatprep.mubr.msk.f32.mxu0 %vm417_vm2, %v4865_v43  ;;  %v6030_v43 = vld [vmem:[#allocation12_spill] sm:$0xff] }
  0x78   : > { %3949 = vmatmul.mubr.msk.f32.gmra.mrb[8].mxu1 %vm417_vm2, %v4926_v53  ;;  %4065 = vmatmul.mubr.msk.f32.gmra.mrb[8].mxu0 %vm417_vm2, %v4873_v50  ;;  %v6032_v50 = vld [vmem:[#allocation14_spill] sm:$0xff] }
  0x79   : > { %3951 = vmatprep.mubr.msk.f32.mxu1 %vm417_vm2, %v4929_v16  ;;  %4067 = vmatprep.mubr.msk.f32.mxu0 %vm417_vm2, %v5002_v44  ;;  %v6031_v44 = vld [vmem:[#allocation13_spill] sm:$0xff] }
  0x7c   : > { %3952 = vmatmul.mubr.msk.f32.gmra.mrb[10].mxu1 %vm417_vm2, %v4935_v58  ;;  %4068 = vmatmul.mubr.msk.f32.gmra.mrb[10].mxu0 %vm417_vm2, %v1529_v18  ;;  %v5454_v18 = vld [vmem:[%s5979_s2] ss:$0 sm:$0xff] }
  0x7d   : > { %3954 = vmatprep.mubr.msk.f32.mxu1 %vm417_vm2, %v4938_v59  ;;  %4070 = vmatprep.mubr.msk.f32.mxu0 %vm417_vm2, %v1531_v48 }
  0x80   : > { %3955 = vmatmul.mubr.msk.f32.gmra.mrb[12].mxu1 %vm417_vm2, %v4941_v7  ;;  %4071 = vmatmul.mubr.msk.f32.gmra.mrb[12].mxu0 %vm417_vm2, %v1533_v35 }
  0x81   : > { %3957 = vmatprep.mubr.msk.f32.mxu1 %vm417_vm2, %v4945_v62  ;;  %4073 = vmatprep.mubr.msk.f32.mxu0 %vm417_vm2, %v1535_v8 }
  0x84   : > { %3958 = vmatmul.mubr.msk.f32.gmra.mrb[14].mxu1 %vm417_vm2, %v4948_v63  ;;  %4074 = vmatmul.mubr.msk.f32.gmra.mrb[14].mxu0 %vm417_vm2, %v1537_v0 }
  0x85   : > { %3960 = vmatprep.mubr.msk.f32.mxu1 %vm417_vm2, %v4964_v23  ;;  %4076 = vmatprep.mubr.msk.f32.mxu0 %vm417_vm2, %v1755_v3 }
  0x88   : > { %3961 = vmatmul.mubr.msk.f32.gmra.mrb[16].mxu1 %vm417_vm2, %v4983_v21  ;;  %4077 = vmatmul.mubr.msk.f32.gmra.mrb[16].mxu0 %vm417_vm2, %v5022_v29 }
  0x89   : > { %3965 = vmatprep.mubr.msk.f32.mxu1 %vm417_vm2, %v4892_v52  ;;  %4081 = vmatprep.mubr.msk.f32.mxu0 %vm417_vm2, %v6020_v28  ;;  %v6035_v52 = vld [vmem:[#allocation17_spill] sm:$0xff] }
  0x8c   : > { %3966 = vmatmul.mubr.msk.f32.vlgmr.msra.gmra.mrb[0].mxu1 %vm417_vm2, %v4897_v4  ;;  %4082 = vmatmul.mubr.msk.f32.vlgmr.msra.gmra.mrb[0].mxu0 %vm417_vm2, %v6021_v36  ;;  %v6036_v4 = vld [vmem:[#allocation18_spill] sm:$0xff] }
  0x8d   : > { %4109 = vmatpush3.msk.msra.mxu0 %vm454_vm0, %v3551_v1  ;;  %3968 = vmatprep.mubr.msk.f32.mxu1 %vm417_vm2, %v4900_v5  ;;  %v6037_v5 = vld [vmem:[#allocation19_spill] sm:$0xff] }
  0x8e   : > { %4084 = vmatprep.mubr.msk.f32.mxu0 %vm417_vm2, %v6022_v26 }
  0x90   : > { %3969 = vmatmul.mubr.msk.f32.gmra.mrb[2].mxu1 %vm417_vm2, %v4903_v60  ;;  %4085 = vmatmul.mubr.msk.f32.gmra.mrb[2].mxu0 %vm417_vm2, %v6023_v27  ;;  %v6038_v60 = vld [vmem:[#allocation20_spill] sm:$0xff] }
  0x91   : > { %3971 = vmatprep.mubr.msk.f32.mxu1 %vm417_vm2, %v4907_v11  ;;  %4087 = vmatprep.mubr.msk.f32.mxu0 %vm417_vm2, %v6024_v30  ;;  %v6039_v11 = vld [vmem:[#allocation21_spill] sm:$0xff] }
  0x94   : > { %3972 = vmatmul.mubr.msk.f32.gmra.mrb[4].mxu1 %vm417_vm2, %v4910_v17  ;;  %4088 = vmatmul.mubr.msk.f32.gmra.mrb[4].mxu0 %vm417_vm2, %v6025_v31  ;;  %v6040_v17 = vld [vmem:[#allocation22_spill] sm:$0xff] }
  0x95   : > { %3974 = vmatprep.mubr.msk.f32.mxu1 %vm417_vm2, %v4917_v20  ;;  %4090 = vmatprep.mubr.msk.f32.mxu0 %vm417_vm2, %v6026_v33  ;;  %v6041_v20 = vld [vmem:[#allocation23_spill] sm:$0xff] }
  0x98   : > { %3975 = vmatmul.mubr.msk.f32.gmra.mrb[6].mxu1 %vm417_vm2, %v4926_v53  ;;  %4091 = vmatmul.mubr.msk.f32.gmra.mrb[6].mxu0 %vm417_vm2, %v6027_v34  ;;  %v6042_v53 = vld [vmem:[#allocation24_spill] sm:$0xff] }
  0x99   : > { %3977 = vmatprep.mubr.msk.f32.mxu1 %vm417_vm2, %v4929_v16  ;;  %4093 = vmatprep.mubr.msk.f32.mxu0 %vm417_vm2, %v6028_v37  ;;  %v6043_v16 = vld [vmem:[#allocation25_spill] sm:$0xff] }
  0x9c   : > { %3978 = vmatmul.mubr.msk.f32.gmra.mrb[8].mxu1 %vm417_vm2, %v4935_v58  ;;  %4094 = vmatmul.mubr.msk.f32.gmra.mrb[8].mxu0 %vm417_vm2, %v6029_v40  ;;  %v6044_v58 = vld [vmem:[#allocation26_spill] sm:$0xff] }
  0x9d   : > { %3980 = vmatprep.mubr.msk.f32.mxu1 %vm417_vm2, %v4938_v59  ;;  %4096 = vmatprep.mubr.msk.f32.mxu0 %vm417_vm2, %v6030_v43  ;;  %v6045_v59 = vld [vmem:[#allocation27_spill] sm:$0xff] }
  0xa0   : > { %3981 = vmatmul.mubr.msk.f32.gmra.mrb[10].mxu1 %vm417_vm2, %v4941_v7  ;;  %4097 = vmatmul.mubr.msk.f32.gmra.mrb[10].mxu0 %vm417_vm2, %v6031_v44  ;;  %v2485_v7 = vld [vmem:[%s5980_s3] sm:$0xff] }
  0xa1   : > { %3983 = vmatprep.mubr.msk.f32.mxu1 %vm417_vm2, %v4945_v62  ;;  %4099 = vmatprep.mubr.msk.f32.mxu0 %vm417_vm2, %v6032_v50  ;;  %v2486_v62 = vld [vmem:[%s5980_s3 + $0x8] sm:$0xff] }
  0xa4   : > { %3984 = vmatmul.mubr.msk.f32.gmra.mrb[12].mxu1 %vm417_vm2, %v4948_v63  ;;  %4100 = vmatmul.mubr.msk.f32.gmra.mrb[12].mxu0 %vm417_vm2, %v6033_v55  ;;  %v4172_v63 = vpack.c.bf16 %v2486_v62, %v2485_v7 }
  0xa5   : > { %3986 = vmatprep.mubr.msk.f32.mxu1 %vm417_vm2, %v4964_v23  ;;  %4102 = vmatprep.mubr.msk.f32.mxu0 %vm417_vm2, %v5082_v41  ;;  %v4176_v23 = vpack.c.bf16 %v2488_v19, %v2487_v6 }
  0xa6   : > { %4173 = vmatprep.subr.bf16.mxu1 %v4172_v63 }
  0xa7   : > { %4175 = vmatpush3.bf16.msra.mxu1 %v4172_v63 }
  0xa8   : > { %3987 = vmatmul.mubr.msk.f32.gmra.mrb[14].mxu1 %vm417_vm2, %v4983_v21  ;;  %4103 = vmatmul.mubr.msk.f32.gmra.mrb[14].mxu0 %vm417_vm2, %v5087_v22 }
  0xa9   : > { %3989 = vmatprep.mubr.msk.f32.mxu1 %vm417_vm2, %v6034_v61  ;;  %4105 = vmatprep.mubr.msk.f32.mxu0 %vm417_vm2, %v5095_v39 }
  0xaa   : > { %4177 = vmatprep.subr.bf16.mxu1 %v4176_v23 }
  0xab   : > { %4179 = vmatpush3.bf16.msra.mxu1 %v4176_v23 }
  0xac   : > { %3990 = vmatmul.mubr.msk.f32.gmra.mrb[16].mxu1 %vm417_vm2, %v6035_v52  ;;  %4106 = vmatmul.mubr.msk.f32.gmra.mrb[16].mxu0 %vm417_vm2, %v6036_v4 }
  0xad   : > { %4110 = vmatprep.mubr.msk.f32.mxu0 %vm417_vm2, %v5119_v54 }
  0xb0   : > { %4111 = vmatmul.mubr.msk.f32.vlgmr.msra.gmra.mrb[0].mxu0 %vm417_vm2, %v5122_v13 }
  0xb1   : > { %4113 = vmatprep.mubr.msk.f32.mxu0 %vm417_vm2, %v6037_v5 }
  0xb4   : > { %4114 = vmatmul.mubr.msk.f32.gmra.mrb[2].mxu0 %vm417_vm2, %v6038_v60 }
  0xb5   : > { %4116 = vmatprep.mubr.msk.f32.mxu0 %vm417_vm2, %v6039_v11 }
  0xb8   : > { %4117 = vmatmul.mubr.msk.f32.gmra.mrb[4].mxu0 %vm417_vm2, %v6040_v17 }
  0xb9   : > { %4119 = vmatprep.mubr.msk.f32.mxu0 %vm417_vm2, %v6041_v20 }
  0xbc   : > { %4120 = vmatmul.mubr.msk.f32.gmra.mrb[6].mxu0 %vm417_vm2, %v6042_v53 }
  0xbd   : > { %4122 = vmatprep.mubr.msk.f32.mxu0 %vm417_vm2, %v5159_v14 }
  0xc0   : > { %4123 = vmatmul.mubr.msk.f32.gmra.mrb[8].mxu0 %vm417_vm2, %v5162_v10 }
  0xc1   : > { %4125 = vmatprep.mubr.msk.f32.mxu0 %vm417_vm2, %v5167_v9 }
  0xc4   : > { %4126 = vmatmul.mubr.msk.f32.gmra.mrb[10].mxu0 %vm417_vm2, %v5170_v42 }
  0xc5   : > { %4128 = vmatprep.mubr.msk.f32.mxu0 %vm417_vm2, %v5173_v15 }
  0xc8   : > { %4129 = vmatmul.mubr.msk.f32.gmra.mrb[12].mxu0 %vm417_vm2, %v6043_v16 }
  0xc9   : > { %4131 = vmatprep.mubr.msk.f32.mxu0 %vm417_vm2, %v6044_v58 }
  0xcc   : > { %4132 = vmatmul.mubr.msk.f32.gmra.mrb[14].mxu0 %vm417_vm2, %v6045_v59 }
  0xcd   : > { %4134 = vmatprep.mubr.msk.f32.mxu0 %vm417_vm2, %v5207_v56 }
  0xd0   : > { %4135 = vmatmul.mubr.msk.f32.gmra.mrb[16].mxu0 %vm417_vm2, %v5210_v25 }
 0x15f   : > { %v3967_v24 = vpop.f32.mrb[0].mxu1 }
 0x160   : > { %v1140_v21 = vpop.f32.mrb[1].mxu1 }
 0x163   : > { %v3970_v39 = vpop.f32.mrb[2].mxu1 }
 0x164   : > { %v1150_v29 = vpop.f32.mrb[3].mxu1 }
 0x167   : > { %v3973_v22 = vpop.f32.mrb[4].mxu1 }
 0x168   : > { %v1160_v41 = vpop.f32.mrb[5].mxu1 }
 0x16b   : > { %v3976_v9 = vpop.f32.mrb[6].mxu1 }
 0x16c   : > { %v1170_v25 = vpop.f32.mrb[7].mxu1 }
 0x16f   : > { %v5431_v54 = vpop.f32.mrb[8].mxu1 }
 0x170   : > { %v5433_v13 = vpop.f32.mrb[9].mxu1 }
 0x173   : > { %v5435_v15 = vpop.f32.mrb[10].mxu1 }
 0x174   : > { %v5437_v42 = vpop.f32.mrb[11].mxu1 }
 0x177   : > { %v5439_v10 = vpop.f32.mrb[12].mxu1 }
 0x178   : > { %v5441_v14 = vpop.f32.mrb[13].mxu1 }
 0x17b   : > { %v5443_v49 = vpop.f32.mrb[14].mxu1 }
 0x17c   : > { %v5445_v12 = vpop.f32.mrb[15].mxu1 }
 0x17f   : > { %v5447_v45 = vpop.f32.mrb[16].mxu1 }
 0x180   : > { %v5449_v47 = vpop.f32.mrb[17].mxu1 }
 0x183   : > { %v4112_v57 = vpop.f32.mrb[0].mxu0 }
 0x184   : > { %v4180_v38 = vadd.f32 %v4112_v57, %v3967_v24  ;;  %v2335_v51 = vpop.f32.mrb[1].mxu0 }
 0x185   : > { %v4181_v48 = vadd.f32 %v2335_v51, %v1140_v21 }
 0x186   : > { %v2450_v56 = vadd.f32 %v4180_v38, %v5454_v18 }
 0x187   : > { %v2449_v32 = vadd.f32 %v4181_v48, %v5454_v18  ;;  %v4115_v35 = vpop.f32.mrb[2].mxu0 }
 0x188   : > { %v2468_v46 = vmax.f32 %v2450_v56, 0.0  ;;  %v4182_v8 = vadd.f32 %v4115_v35, %v3970_v39  ;;  %v2345_v0 = vpop.f32.mrb[3].mxu0 }
 0x189   : > { %v2467_v1 = vmax.f32 %v2449_v32, 0.0  ;;  %v4183_v2 = vadd.f32 %v2345_v0, %v1150_v29 }
 0x18a   : > { %v3612_v3 = vpack.c.bf16 %v2468_v46, %v2468_v46  ;;  %v2452_v28 = vadd.f32 %v4182_v8, %v5454_v18 }
 0x18b   : > { %v3611_v36 = vpack.c.bf16 %v2467_v1, %v2467_v1  ;;  %v2451_v26 = vadd.f32 %v4183_v2, %v5454_v18  ;;  %v4118_v27 = vpop.f32.mrb[4].mxu0  ;;  %4145 = vmatprep.mubr.msk.f32.mxu1 %vm2496_vm7, %v2467_v1 }
 0x18c   : > { %3219 = vst.msk [vmem:[%s5462_s8 + $0x4] sm:$0xf] %vm3217_vm8, %v3612_v3  ;;  %v2470_v30 = vmax.f32 %v2452_v28, 0.0  ;;  %v4184_v31 = vadd.f32 %v4118_v27, %v3973_v22  ;;  %v2355_v33 = vpop.f32.mrb[5].mxu0  ;;  %4146 = vmatmul.mubr.msk.f32.vlgmr.msra.gmra.mrb[18].mxu1 %vm2496_vm7, %v2468_v46 }
 0x18d   : > { %3218 = vst.msk [vmem:[%s5462_s8] sm:$0xf] %vm3217_vm8, %v3611_v36  ;;  %v2469_v34 = vmax.f32 %v2451_v26, 0.0  ;;  %v4185_v37 = vadd.f32 %v2355_v33, %v1160_v41 }
 0x18e   : > { %v3614_v40 = vpack.c.bf16 %v2470_v30, %v2470_v30  ;;  %v2454_v43 = vadd.f32 %v4184_v31, %v5454_v18 }
 0x18f   : > { %v3613_v44 = vpack.c.bf16 %v2469_v34, %v2469_v34  ;;  %v2453_v50 = vadd.f32 %v4185_v37, %v5454_v18  ;;  %v4121_v55 = vpop.f32.mrb[6].mxu0  ;;  %4148 = vmatprep.mubr.msk.f32.mxu1 %vm2496_vm7, %v2469_v34 }
 0x190   : > { %3221 = vst.msk [vmem:[%s5462_s8 + $0xc] sm:$0xf] %vm3217_vm8, %v3614_v40  ;;  %v2472_v61 = vmax.f32 %v2454_v43, 0.0  ;;  %v4186_v52 = vadd.f32 %v4121_v55, %v3976_v9  ;;  %v2365_v4 = vpop.f32.mrb[7].mxu0  ;;  %4149 = vmatmul.mubr.msk.f32.gmra.mrb[20].mxu1 %vm2496_vm7, %v2470_v30 }
 0x191   : > { %3220 = vst.msk [vmem:[%s5462_s8 + $0x8] sm:$0xf] %vm3217_vm8, %v3613_v44  ;;  %v2471_v5 = vmax.f32 %v2453_v50, 0.0  ;;  %v4187_v60 = vadd.f32 %v2365_v4, %v1170_v25 }
 0x192   : > { %v3616_v11 = vpack.c.bf16 %v2472_v61, %v2472_v61  ;;  %v2456_v17 = vadd.f32 %v4186_v52, %v5454_v18 }
 0x193   : > { %v3615_v20 = vpack.c.bf16 %v2471_v5, %v2471_v5  ;;  %v2455_v53 = vadd.f32 %v4187_v60, %v5454_v18  ;;  %v4124_v16 = vpop.f32.mrb[8].mxu0  ;;  %4151 = vmatprep.mubr.msk.f32.mxu1 %vm2496_vm7, %v2471_v5 }
 0x194   : > { %3223 = vst.msk [vmem:[%s5462_s8 + $0x14] sm:$0xf] %vm3217_vm8, %v3616_v11  ;;  %v2474_v58 = vmax.f32 %v2456_v17, 0.0  ;;  %v4188_v59 = vadd.f32 %v4124_v16, %v5431_v54  ;;  %v2375_v7 = vpop.f32.mrb[9].mxu0  ;;  %4152 = vmatmul.mubr.msk.f32.gmra.mrb[22].mxu1 %vm2496_vm7, %v2472_v61 }
 0x195   : > { %3222 = vst.msk [vmem:[%s5462_s8 + $0x10] sm:$0xf] %vm3217_vm8, %v3615_v20  ;;  %v2473_v62 = vmax.f32 %v2455_v53, 0.0  ;;  %v4189_v63 = vadd.f32 %v2375_v7, %v5433_v13 }
 0x196   : > { %v3618_v6 = vpack.c.bf16 %v2474_v58, %v2474_v58  ;;  %v2458_v19 = vadd.f32 %v4188_v59, %v5454_v18 }
 0x197   : > { %v3617_v23 = vpack.c.bf16 %v2473_v62, %v2473_v62  ;;  %v2457_v24 = vadd.f32 %v4189_v63, %v5454_v18  ;;  %v4127_v21 = vpop.f32.mrb[10].mxu0  ;;  %4154 = vmatprep.mubr.msk.f32.mxu1 %vm2496_vm7, %v2473_v62 }
 0x198   : > { %3225 = vst.msk [vmem:[%s5462_s8 + $0x1c] sm:$0xf] %vm3217_vm8, %v3618_v6  ;;  %v2476_v39 = vmax.f32 %v2458_v19, 0.0  ;;  %v4190_v29 = vadd.f32 %v4127_v21, %v5435_v15  ;;  %v2385_v22 = vpop.f32.mrb[11].mxu0  ;;  %4155 = vmatmul.mubr.msk.f32.gmra.mrb[24].mxu1 %vm2496_vm7, %v2474_v58 }
 0x199   : > { %3224 = vst.msk [vmem:[%s5462_s8 + $0x18] sm:$0xf] %vm3217_vm8, %v3617_v23  ;;  %v2475_v41 = vmax.f32 %v2457_v24, 0.0  ;;  %v4191_v9 = vadd.f32 %v2385_v22, %v5437_v42 }
 0x19a   : > { %v3620_v25 = vpack.c.bf16 %v2476_v39, %v2476_v39  ;;  %v2460_v54 = vadd.f32 %v4190_v29, %v5454_v18 }
 0x19b   : > { %v3619_v13 = vpack.c.bf16 %v2475_v41, %v2475_v41  ;;  %v2459_v57 = vadd.f32 %v4191_v9, %v5454_v18  ;;  %v4130_v38 = vpop.f32.mrb[12].mxu0  ;;  %4157 = vmatprep.mubr.msk.f32.mxu1 %vm2496_vm7, %v2475_v41 }
 0x19c   : > { %3227 = vst.msk [vmem:[%s5462_s8 + $0x24] sm:$0xf] %vm3217_vm8, %v3620_v25  ;;  %v2478_v15 = vmax.f32 %v2460_v54, 0.0  ;;  %v4192_v51 = vadd.f32 %v4130_v38, %v5439_v10  ;;  %v2395_v48 = vpop.f32.mrb[13].mxu0  ;;  %4158 = vmatmul.mubr.msk.f32.gmra.mrb[26].mxu1 %vm2496_vm7, %v2476_v39 }
 0x19d   : > { %3226 = vst.msk [vmem:[%s5462_s8 + $0x20] sm:$0xf] %vm3217_vm8, %v3619_v13  ;;  %v2477_v42 = vmax.f32 %v2459_v57, 0.0  ;;  %v4193_v56 = vadd.f32 %v2395_v48, %v5441_v14 }
 0x19e   : > { %v3622_v32 = vpack.c.bf16 %v2478_v15, %v2478_v15  ;;  %v2462_v35 = vadd.f32 %v4192_v51, %v5454_v18 }
 0x19f   : > { %v3621_v46 = vpack.c.bf16 %v2477_v42, %v2477_v42  ;;  %v2461_v8 = vadd.f32 %v4193_v56, %v5454_v18  ;;  %v4133_v0 = vpop.f32.mrb[14].mxu0  ;;  %4160 = vmatprep.mubr.msk.f32.mxu1 %vm2496_vm7, %v2477_v42  ;;  %v2706_v56 = vlaneseq }
 0x1a0   : > { %3229 = vst.msk [vmem:[%s5462_s8 + $0x2c] sm:$0xf] %vm3217_vm8, %v3622_v32  ;;  %v2480_v10 = vmax.f32 %v2462_v35, 0.0  ;;  %v4194_v1 = vadd.f32 %v4133_v0, %v5443_v49  ;;  %v2405_v2 = vpop.f32.mrb[15].mxu0  ;;  %4161 = vmatmul.mubr.msk.f32.gmra.mrb[28].mxu1 %vm2496_vm7, %v2478_v15 }
 0x1a1   : > { %3228 = vst.msk [vmem:[%s5462_s8 + $0x28] sm:$0xf] %vm3217_vm8, %v3621_v46  ;;  %v2479_v14 = vmax.f32 %v2461_v8, 0.0  ;;  %v4195_v3 = vadd.f32 %v2405_v2, %v5445_v12 }
 0x1a2   : > { %v3624_v28 = vpack.c.bf16 %v2480_v10, %v2480_v10  ;;  %v2464_v36 = vadd.f32 %v4194_v1, %v5454_v18 }
 0x1a3   : > { %v3623_v26 = vpack.c.bf16 %v2479_v14, %v2479_v14  ;;  %v2463_v27 = vadd.f32 %v4195_v3, %v5454_v18  ;;  %v4136_v30 = vpop.f32.mrb[16].mxu0  ;;  %4163 = vmatprep.mubr.msk.f32.mxu1 %vm2496_vm7, %v2479_v14 }
 0x1a4   : > { %3231 = vst.msk [vmem:[%s5462_s8 + $0x34] sm:$0xf] %vm3217_vm8, %v3624_v28  ;;  %v2482_v49 = vmax.f32 %v2464_v36, 0.0  ;;  %v4196_v31 = vadd.f32 %v4136_v30, %v5447_v45  ;;  %v2415_v33 = vpop.f32.mrb[17].mxu0  ;;  %4164 = vmatmul.mubr.msk.f32.gmra.mrb[30].mxu1 %vm2496_vm7, %v2480_v10  ;;  %v5583_v28 = vand.u32 127, %v2706_v56 }
 0x1a5   : > { %3230 = vst.msk [vmem:[%s5462_s8 + $0x30] sm:$0xf] %vm3217_vm8, %v3623_v26  ;;  %v2481_v12 = vmax.f32 %v2463_v27, 0.0  ;;  %v4197_v34 = vadd.f32 %v2415_v33, %v5449_v47  ;;  %v5547_v47 = vld [vmem:[%s5981_s4] ss:$0 sm:$0xff] }
 0x1a6   : > { %v3626_v37 = vpack.c.bf16 %v2482_v49, %v2482_v49  ;;  %v2466_v40 = vadd.f32 %v4196_v31, %v5454_v18  ;;  %vm3089_vm9 = vcmp.eq.s32.totalorder %v5583_v28, 9  ;;  %vm3086_vm10 = vcmp.ge.s32.totalorder %v5583_v28, 3 }
 0x1a7   : > { %v3625_v43 = vpack.c.bf16 %v2481_v12, %v2481_v12  ;;  %v2465_v44 = vadd.f32 %v4197_v34, %v5454_v18  ;;  %4166 = vmatprep.mubr.msk.f32.mxu1 %vm2496_vm7, %v2481_v12  ;;  %vm3087_vm11 = vcmp.lt.s32.totalorder %v5583_v28, 9 }
 0x1a8   : > { %3233 = vst.msk [vmem:[%s5462_s8 + $0x3c] sm:$0xf] %vm3217_vm8, %v3626_v37  ;;  %v2484_v45 = vmax.f32 %v2466_v40, 0.0  ;;  %4167 = vmatmul.mubr.msk.f32.gmra.mrb[32].mxu1 %vm2496_vm7, %v2482_v49  ;;  %vm5654_vm1 = vmand %vm3086_vm10, %vm3087_vm11 }
 0x1a9   : > { %3232 = vst.msk [vmem:[%s5462_s8 + $0x38] sm:$0xf] %vm3217_vm8, %v3625_v43  ;;  %v2483_v50 = vmax.f32 %v2465_v44, 0.0 }
 0x1aa   : > { %v3628_v55 = vpack.c.bf16 %v2484_v45, %v2484_v45 }
 0x1ab   : > { %v3627_v61 = vpack.c.bf16 %v2483_v50, %v2483_v50  ;;  %4169 = vmatprep.mubr.msk.f32.mxu1 %vm2496_vm7, %v2483_v50 }
 0x1ac   : > { %3235 = vst.msk [vmem:[%s5462_s8 + $0x44] sm:$0xf] %vm3217_vm8, %v3628_v55  ;;  %4170 = vmatmul.mubr.msk.f32.gmra.mrb[34].mxu1 %vm2496_vm7, %v2484_v45 }
 0x1ad   : > { %3234 = vst.msk [vmem:[%s5462_s8 + $0x40] sm:$0xf] %vm3217_vm8, %v3627_v61 }
 0x25f   : > { %v4147_v18 = vpop.f32.mrb[18].mxu1 }
 0x260   : > { %v5550_v52 = vadd.f32 %v4147_v18, %v5547_v47  ;;  %v2617_v4 = vpop.f32.mrb[19].mxu1 }
 0x261   : > { %v5553_v5 = vadd.f32 %v5547_v47, %v2617_v4 }
 0x262   : > { %v2727_v60 = vand.u32 2147483647, %v5550_v52  ;;  %v2979_v11 = vsub.f32 0.0, %v5550_v52  ;;  %v2709_v36 = vmax.f32 %v5550_v52, 0.0 }
 0x263   : > { %v2726_v17 = vand.u32 2147483647, %v5553_v5  ;;  %v2978_v20 = vsub.f32 0.0, %v5553_v5  ;;  %v4150_v53 = vpop.f32.mrb[20].mxu1  ;;  %v2708_v49 = vmax.f32 %v5553_v5, 0.0 }
 0x264   : > { %v2745_v16 = vsub.f32 0.0, %v2727_v60  ;;  %v2998_v58 = vmul.f32 1.442695, %v2979_v11  ;;  %v5560_v59 = vadd.f32 %v4150_v53, %v5547_v47  ;;  %v2627_v7 = vpop.f32.mrb[21].mxu1 }
 0x265   : > { %v2744_v62 = vsub.f32 0.0, %v2726_v17  ;;  %v2996_v63 = vmul.f32 1.442695, %v2978_v20  ;;  %v5563_v6 = vadd.f32 %v5547_v47, %v2627_v7 }
 0x266   : > { %v2764_v19 = vmul.f32 1.442695, %v2745_v16  ;;  %4368 = vpow2.f32 %v2998_v58  ;;  %v2729_v23 = vand.u32 2147483647, %v5560_v59  ;;  %v2981_v21 = vsub.f32 0.0, %v5560_v59 }
 0x267   : > { %v2762_v24 = vmul.f32 1.442695, %v2744_v62  ;;  %4370 = vpow2.f32 %v2996_v63  ;;  %v4153_v39 = vpop.f32.mrb[22].mxu1  ;;  %v2728_v22 = vand.u32 2147483647, %v5563_v6  ;;  %v2980_v41 = vsub.f32 0.0, %v5563_v6 }
 0x268   : > { %4372 = vpow2.f32 %v2764_v19  ;;  %v2747_v29 = vsub.f32 0.0, %v2729_v23  ;;  %v2637_v9 = vpop.f32.mrb[23].mxu1  ;;  %v3002_v25 = vmul.f32 1.442695, %v2981_v21  ;;  %v5570_v54 = vadd.f32 %v4153_v39, %v5547_v47 }
 0x269   : > { %4374 = vpow2.f32 %v2762_v24  ;;  %v5573_v13 = vadd.f32 %v5547_v47, %v2637_v9  ;;  %v2746_v38 = vsub.f32 0.0, %v2728_v22  ;;  %v3000_v15 = vmul.f32 1.442695, %v2980_v41 }
 0x26a   : > { %v2768_v57 = vmul.f32 1.442695, %v2747_v29  ;;  %4376 = vpow2.f32 %v3002_v25  ;;  %v2731_v51 = vand.u32 2147483647, %v5570_v54  ;;  %v2983_v48 = vsub.f32 0.0, %v5570_v54 }
 0x26b   : > { %v4156_v42 = vpop.f32.mrb[24].mxu1  ;;  %v2766_v32 = vmul.f32 1.442695, %v2746_v38  ;;  %v2730_v35 = vand.u32 2147483647, %v5573_v13  ;;  %v2982_v37 = vsub.f32 0.0, %v5573_v13 }
 0x26c   : > { %4378 = vpow2.f32 %v2768_v57  ;;  %v2647_v46 = vpop.f32.mrb[25].mxu1  ;;  %v2749_v8 = vsub.f32 0.0, %v2731_v51  ;;  %v3006_v0 = vmul.f32 1.442695, %v2983_v48  ;;  %v5579_v1 = vadd.f32 %v4156_v42, %v5547_v47 }
 0x26d   : > { %4380 = vpow2.f32 %v3000_v15  ;;  %v2748_v10 = vsub.f32 0.0, %v2730_v35  ;;  %v5592_v40 = vadd.f32 %v5547_v47, %v2647_v46  ;;  %v2711_v45 = vmax.f32 %v5560_v59, 0.0 }
 0x26e   : > { %4382 = vpow2.f32 %v2766_v32  ;;  %v2772_v2 = vmul.f32 1.442695, %v2749_v8  ;;  %v2733_v31 = vand.u32 2147483647, %v5579_v1  ;;  %v2985_v50 = vsub.f32 0.0, %v5579_v1 }
 0x26f   : > { %4384 = vpow2.f32 %v3006_v0  ;;  %v5581_v14 = vpop.f32.mrb[26].mxu1  ;;  %v2770_v26 = vmul.f32 1.442695, %v2748_v10  ;;  %v2710_v20 = vmax.f32 %v5563_v6, 0.0  ;;  %v3004_v7 = vmul.f32 1.442695, %v2982_v37 }
 0x270   : > { %v4369_v3 = vpop.eup %4368  ;;  %4386 = vpow2.f32 %v2772_v2  ;;  %v5588_v33 = vpop.f32.mrb[27].mxu1  ;;  %v2751_v53 = vsub.f32 0.0, %v2733_v31  ;;  %v2732_v62 = vand.u32 2147483647, %v5592_v40  ;;  %v2713_v21 = vmax.f32 %v5570_v54, 0.0 }
 0x271   : > { %v4371_v27 = vpop.eup %4370  ;;  %v3033_v30 = vadd.f32 1.0, %v4369_v3  ;;  %4388 = vpow2.f32 %v2770_v26  ;;  %v3010_v25 = vmul.f32 1.442695, %v2985_v50  ;;  %v2984_v50 = vsub.f32 0.0, %v5592_v40 }
 0x272   : > { %v4373_v12 = vpop.eup %4372  ;;  %v3032_v34 = vadd.f32 1.0, %v4371_v27  ;;  %v2776_v42 = vmul.f32 1.442695, %v2751_v53  ;;  %v2750_v35 = vsub.f32 0.0, %v2732_v62 }
 0x273   : > { %v4375_v43 = vpop.eup %4374  ;;  %v2807_v44 = vadd.f32 1.0, %v4373_v12  ;;  %4390 = vrcp.f32 %v3033_v30  ;;  %v5596_v55 = vpop.f32.mrb[28].mxu1  ;;  %v2810_v61 = vmul.f32 -0.5, %v4373_v12  ;;  %v2813_v17 = vand.u32 2147483647, %v4373_v12 }
 0x274   : > { %v2798_v18 = vadd.f32 1.0, %v4375_v43  ;;  %v2801_v4 = vmul.f32 -0.5, %v4375_v43  ;;  %4392 = vrcp.f32 %v3032_v34  ;;  %v5598_v60 = vpop.f32.mrb[29].mxu1  ;;  %v4377_v11 = vpop.eup %4376  ;;  %v2804_v19 = vand.u32 2147483647, %v4375_v43 }
 0x275   : > { %4394 = vlog2.f32 %v2807_v44  ;;  %v3035_v58 = vadd.f32 1.0, %v4377_v11  ;;  %v2811_v22 = vadd.f32 1.0, %v2810_v61  ;;  %vm5610_vm12 = vcmp.lt.f32.partialorder %v2813_v17, 0.0004427343 }
 0x276   : > { %v4379_v16 = vpop.eup %4378  ;;  %4396 = vlog2.f32 %v2798_v18  ;;  %v2802_v41 = vadd.f32 1.0, %v2801_v4  ;;  %vm5616_vm14 = vcmp.lt.f32.partialorder %v2804_v19, 0.0004427343 }
 0x277   : > { %v4381_v63 = vpop.eup %4380  ;;  %v2825_v23 = vadd.f32 1.0, %v4379_v16  ;;  %v2828_v24 = vmul.f32 -0.5, %v4379_v16  ;;  %v5606_v39 = vpop.f32.mrb[30].mxu1  ;;  %v2831_v51 = vand.u32 2147483647, %v4379_v16  ;;  %v2812_v26 = vmul.f32 %v4373_v12, %v2811_v22 }
 0x278   : > { %v4383_v29 = vpop.eup %4382  ;;  %v3034_v9 = vadd.f32 1.0, %v4381_v63  ;;  %v5608_v57 = vpop.f32.mrb[31].mxu1  ;;  %v2803_v27 = vmul.f32 %v4375_v43, %v2802_v41  ;;  %v2774_v43 = vmul.f32 1.442695, %v2750_v35  ;;  %v3008_v41 = vmul.f32 1.442695, %v2984_v50 }
 0x279   : > { %v4385_v38 = vpop.eup %4384  ;;  %4398 = vlog2.f32 %v2825_v23  ;;  %v2816_v48 = vadd.f32 1.0, %v4383_v29  ;;  %v2819_v56 = vmul.f32 -0.5, %v4383_v29  ;;  %v2829_v0 = vadd.f32 1.0, %v2828_v24 }
 0x27a   : > { %4400 = vrcp.f32 %v3035_v58  ;;  %v3037_v32 = vadd.f32 1.0, %v4385_v38  ;;  %v5614_v46 = vpop.eup %4386  ;;  %v2822_v10 = vand.u32 2147483647, %v4383_v29  ;;  %vm5629_vm15 = vcmp.lt.f32.partialorder %v2831_v51, 0.0004427343 }
 0x27b   : > { %4402 = vlog2.f32 %v2816_v48  ;;  %v5620_v2 = vpop.f32.mrb[32].mxu1  ;;  %v5622_v3 = vpop.eup %4388  ;;  %v2843_v30 = vadd.f32 1.0, %v5614_v46  ;;  %v2820_v37 = vadd.f32 1.0, %v2819_v56  ;;  %v2846_v12 = vmul.f32 -0.5, %v5614_v46 }
 0x27c   : > { %4404 = vrcp.f32 %v3034_v9  ;;  %v5625_v31 = vpop.f32.mrb[33].mxu1  ;;  %v2834_v44 = vadd.f32 1.0, %v5622_v3  ;;  %v2830_v11 = vmul.f32 %v4379_v16, %v2829_v0  ;;  %vm5634_vm0 = vcmp.lt.f32.partialorder %v2822_v10, 0.0004427343 }
 0x27d   : > { %v4391_v34 = vpop.eup %4390  ;;  %4406 = vrcp.f32 %v3037_v32  ;;  %v2849_v53 = vand.u32 2147483647, %v5614_v46  ;;  %v2837_v23 = vmul.f32 -0.5, %v5622_v3  ;;  %v2821_v22 = vmul.f32 %v4383_v29, %v2820_v37 }
 0x27e   : > { %v4393_v61 = vpop.eup %4392  ;;  %4408 = vlog2.f32 %v2843_v30  ;;  %v3091_v19 = vsel %vm3089_vm9, %v4391_v34, %v5550_v52  ;;  %v2847_v51 = vadd.f32 1.0, %v2846_v12  ;;  %v2840_v12 = vand.u32 2147483647, %v5622_v3 }
 0x27f   : > { %v4395_v4 = vpop.eup %4394  ;;  %4410 = vlog2.f32 %v2834_v44  ;;  %v5639_v58 = vpop.f32.mrb[34].mxu1  ;;  %vm5676_vm2 = vcmp.lt.f32.partialorder %v2849_v53, 0.0004427343  ;;  %v2838_v35 = vadd.f32 1.0, %v2837_v23 }
 0x280   : > { %v4397_v62 = vpop.eup %4396  ;;  %v2809_v63 = vmul.f32 0.6931472, %v4395_v4  ;;  %4412 = vpow2.f32 %v3004_v7  ;;  %v5646_v16 = vpop.f32.mrb[35].mxu1  ;;  %v5660_v7 = vadd.f32 %v5581_v14, %v5547_v47  ;;  %v2848_v37 = vmul.f32 %v5614_v46, %v2847_v51 }
 0x281   : > { %v2800_v24 = vmul.f32 0.6931472, %v4397_v62  ;;  %4414 = vpow2.f32 %v2776_v42  ;;  %vm2841_vm3 = vcmp.lt.f32.partialorder %v2840_v12, 0.0004427343 }
 0x282   : > { %v2815_v9 = vsel %vm5610_vm12, %v2812_v26, %v2809_v63  ;;  %4416 = vpow2.f32 %v3010_v25  ;;  %v3090_v25 = vsel %vm3089_vm9, %v4393_v61, %v5553_v5  ;;  %v2735_v8 = vand.u32 2147483647, %v5660_v7 }
 0x283   : > { %v4399_v29 = vpop.eup %4398  ;;  %v2961_v15 = vadd.f32 %v2815_v9, %v2709_v36  ;;  %v2806_v48 = vsel %vm5616_vm14, %v2803_v27, %v2800_v24  ;;  %4418 = vpow2.f32 %v2774_v43  ;;  %v2987_v0 = vsub.f32 0.0, %v5660_v7 }
 0x284   : > { %v4401_v14 = vpop.eup %4400  ;;  %v2960_v42 = vadd.f32 %v2806_v48, %v2708_v49  ;;  %v2827_v56 = vmul.f32 0.6931472, %v4399_v29  ;;  %4420 = vpow2.f32 %v3008_v41  ;;  %v5692_v27 = vadd.f32 %v5547_v47, %v5588_v33 }
 0x285   : > { %v4403_v52 = vpop.eup %4402  ;;  %v3109_v36 = vsel %vm5654_vm1, %v2961_v15, %v3091_v19  ;;  %v2753_v44 = vsub.f32 0.0, %v2735_v8  ;;  %v3014_v50 = vmul.f32 1.442695, %v2987_v0  ;;  %v3093_v18 = vsel %vm3089_vm9, %v4401_v14, %v5560_v59 }
 0x286   : > { %v4405_v10 = vpop.eup %4404  ;;  %3128 = vst.msk [vmem:[%s5665_s13 + $0x8] sm:$0xff] %vm3126_vm13, %v3109_v36  ;;  %v3108_v5 = vsel %vm5654_vm1, %v2960_v42, %v3090_v25  ;;  %v2833_v49 = vsel %vm5629_vm15, %v2830_v11, %v2827_v56  ;;  %v2818_v26 = vmul.f32 0.6931472, %v4403_v52  ;;  %v2734_v43 = vand.u32 2147483647, %v5692_v27 }
 0x287   : > { %v4407_v30 = vpop.eup %4406  ;;  %3127 = vst.msk [vmem:[%s5665_s13] sm:$0xff] %vm3126_vm13, %v3108_v5  ;;  %v2963_v34 = vadd.f32 %v2833_v49, %v2711_v45  ;;  %v2780_v53 = vmul.f32 1.442695, %v2753_v44  ;;  %v3092_v59 = vsel %vm3089_vm9, %v4405_v10, %v5563_v6  ;;  %v2839_v63 = vmul.f32 %v5622_v3, %v2838_v35 }
 0x288   : > { %v4409_v61 = vpop.eup %4408  ;;  %v2824_v33 = vsel %vm5634_vm0, %v2821_v22, %v2818_v26  ;;  %v3095_v17 = vsel %vm3089_vm9, %v4407_v30, %v5570_v54  ;;  %4422 = vpow2.f32 %v3014_v50  ;;  %v2752_v9 = vsub.f32 0.0, %v2734_v43 }
 0x289   : > { %v4411_v4 = vpop.eup %4410  ;;  %v3111_v45 = vsel %vm5654_vm1, %v2963_v34, %v3093_v18  ;;  %v2962_v46 = vadd.f32 %v2824_v33, %v2710_v20  ;;  %v2845_v11 = vmul.f32 0.6931472, %v4409_v61  ;;  %4424 = vpow2.f32 %v2780_v53 }
 0x28a   : > { %v4413_v62 = vpop.eup %4412  ;;  %3130 = vst.msk [vmem:[%s5665_s13 + $0x18] sm:$0xff] %vm3126_vm13, %v3111_v45  ;;  %v2836_v41 = vmul.f32 0.6931472, %v4411_v4  ;;  %v2986_v48 = vsub.f32 0.0, %v5692_v27  ;;  %v2712_v42 = vmax.f32 %v5573_v13, 0.0  ;;  %v2715_v56 = vmax.f32 %v5579_v1, 0.0 }
 0x28b   : > { %v5719_v19 = vpop.eup %4414  ;;  %v3110_v20 = vsel %vm5654_vm1, %v2962_v46, %v3092_v59  ;;  %v2851_v23 = vsel %vm5676_vm2, %v2848_v37, %v2845_v11  ;;  %v3036_v24 = vadd.f32 1.0, %v4413_v62  ;;  %v2778_v36 = vmul.f32 1.442695, %v2752_v9 }
 0x28c   : > { %v4417_v22 = vpop.eup %4416  ;;  %3129 = vst.msk [vmem:[%s5665_s13 + $0x10] sm:$0xff] %vm3126_vm13, %v3110_v20  ;;  %v2965_v6 = vadd.f32 %v2851_v23, %v2713_v21  ;;  %v2861_v3 = vadd.f32 1.0, %v5719_v19  ;;  %v2864_v29 = vmul.f32 -0.5, %v5719_v19  ;;  %v5739_v21 = vadd.f32 %v5596_v55, %v5547_v47 }
 0x28d   : > { %v5730_v51 = vpop.eup %4418  ;;  %4426 = vrcp.f32 %v3036_v24  ;;  %v3039_v15 = vadd.f32 1.0, %v4417_v22  ;;  %v2842_v32 = vsel %vm2841_vm3, %v2839_v63, %v2836_v41  ;;  %v2714_v8 = vmax.f32 %v5592_v40, 0.0 }
 0x28e   : > { %v4421_v25 = vpop.eup %4420  ;;  %v3113_v14 = vsel %vm5654_vm1, %v2965_v6, %v3095_v17  ;;  %4428 = vlog2.f32 %v2861_v3  ;;  %v2852_v54 = vadd.f32 1.0, %v5730_v51  ;;  %v2865_v35 = vadd.f32 1.0, %v2864_v29 }
 0x28f   : > { %3132 = vst.msk [vmem:[%s5665_s13 + $0x28] sm:$0xff] %vm3126_vm13, %v3113_v14  ;;  %4430 = vrcp.f32 %v3039_v15  ;;  %v3038_v52 = vadd.f32 1.0, %v4421_v25  ;;  %v2855_v0 = vmul.f32 -0.5, %v5730_v51  ;;  %v3012_v10 = vmul.f32 1.442695, %v2986_v48 }
 0x290   : > { %4432 = vlog2.f32 %v2852_v54  ;;  %v2737_v55 = vand.u32 2147483647, %v5739_v21  ;;  %v2989_v5 = vsub.f32 0.0, %v5739_v21  ;;  %v5751_v49 = vadd.f32 %v5547_v47, %v5598_v60 }
 0x291   : > { %4434 = vrcp.f32 %v3038_v52  ;;  %v2964_v26 = vadd.f32 %v2842_v32, %v2712_v42  ;;  %v2717_v30 = vmax.f32 %v5660_v7, 0.0  ;;  %v5756_v34 = vadd.f32 %v5606_v39, %v5547_v47 }
 0x292   : > { %4436 = vpow2.f32 %v2778_v36  ;;  %v4423_v37 = vpop.eup %4422  ;;  %v2867_v44 = vand.u32 2147483647, %v5719_v19  ;;  %v2858_v50 = vand.u32 2147483647, %v5730_v51  ;;  %v2755_v61 = vsub.f32 0.0, %v2737_v55 }
 0x293   : > { %4438 = vpow2.f32 %v3012_v10  ;;  %v5760_v18 = vpop.eup %4424  ;;  %v2866_v60 = vmul.f32 %v5719_v19, %v2865_v35  ;;  %v3041_v33 = vadd.f32 1.0, %v4423_v37  ;;  %v2736_v12 = vand.u32 2147483647, %v5751_v49 }
 0x294   : > { %v2988_v43 = vsub.f32 0.0, %v5751_v49  ;;  %v2856_v4 = vadd.f32 1.0, %v2855_v0  ;;  %v2879_v39 = vadd.f32 1.0, %v5760_v18  ;;  %v2784_v45 = vmul.f32 1.442695, %v2755_v61 }
 0x295   : > { %v3018_v46 = vmul.f32 1.442695, %v2989_v5  ;;  %4440 = vrcp.f32 %v3041_v33  ;;  %v2754_v53 = vsub.f32 0.0, %v2736_v12  ;;  %v2739_v62 = vand.u32 2147483647, %v5756_v34 }
 0x296   : > { %v5769_v59 = vadd.f32 %v5547_v47, %v5608_v57  ;;  %4442 = vlog2.f32 %v2879_v39  ;;  %v2882_v19 = vmul.f32 -0.5, %v5760_v18  ;;  %v3016_v20 = vmul.f32 1.442695, %v2988_v43 }
 0x297   : > { %v4427_v11 = vpop.eup %4426  ;;  %4444 = vpow2.f32 %v2784_v45  ;;  %v2782_v6 = vmul.f32 1.442695, %v2754_v53  ;;  %vm2868_vm4 = vcmp.lt.f32.partialorder %v2867_v44, 0.0004427343  ;;  %v2857_v57 = vmul.f32 %v5730_v51, %v2856_v4 }
 0x298   : > { %v4429_v17 = vpop.eup %4428  ;;  %v3094_v63 = vsel %vm3089_vm9, %v4427_v11, %v5573_v13  ;;  %4446 = vpow2.f32 %v3018_v46  ;;  %v2757_v3 = vsub.f32 0.0, %v2739_v62  ;;  %v2991_v29 = vsub.f32 0.0, %v5756_v34 }
 0x299   : > { %v4431_v23 = vpop.eup %4430  ;;  %v3112_v24 = vsel %vm5654_vm1, %v2964_v26, %v3094_v63  ;;  %v2863_v22 = vmul.f32 0.6931472, %v4429_v17  ;;  %4448 = vpow2.f32 %v2782_v6  ;;  %vm2859_vm5 = vcmp.lt.f32.partialorder %v2858_v50, 0.0004427343 }
 0x29a   : > { %v4433_v41 = vpop.eup %4432  ;;  %3131 = vst.msk [vmem:[%s5665_s13 + $0x20] sm:$0xff] %vm3126_vm13, %v3112_v24  ;;  %4450 = vpow2.f32 %v3016_v20  ;;  %v2788_v25 = vmul.f32 1.442695, %v2757_v3  ;;  %v3097_v54 = vsel %vm3089_vm9, %v4431_v23, %v5579_v1  ;;  %v2883_v42 = vadd.f32 1.0, %v2882_v19 }
 0x29b   : > { %v2869_v13 = vsel %vm2868_vm4, %v2866_v60, %v2863_v22  ;;  %v2854_v9 = vmul.f32 0.6931472, %v4433_v41  ;;  %v4435_v15 = vpop.eup %4434  ;;  %v2738_v32 = vand.u32 2147483647, %v5769_v59  ;;  %v3022_v0 = vmul.f32 1.442695, %v2991_v29 }
 0x29c   : > { %v2967_v48 = vadd.f32 %v2869_v13, %v2715_v56  ;;  %v5781_v14 = vpop.eup %4436  ;;  %v3096_v1 = vsel %vm3089_vm9, %v4435_v15, %v5592_v40  ;;  %4452 = vpow2.f32 %v2788_v25  ;;  %v2885_v26 = vand.u32 2147483647, %v5760_v18 }
 0x29d   : > { %v2860_v51 = vsel %vm2859_vm5, %v2857_v57, %v2854_v9  ;;  %v4439_v52 = vpop.eup %4438  ;;  %v2870_v35 = vadd.f32 1.0, %v5781_v14  ;;  %v2756_v55 = vsub.f32 0.0, %v2738_v32  ;;  %v2716_v44 = vmax.f32 %v5692_v27, 0.0 }
 0x29e   : > { %v3115_v36 = vsel %vm5654_vm1, %v2967_v48, %v3097_v54  ;;  %v2966_v56 = vadd.f32 %v2860_v51, %v2714_v8  ;;  %v3040_v10 = vadd.f32 1.0, %v4439_v52  ;;  %v2990_v8 = vsub.f32 0.0, %v5769_v59 }
 0x29f   : > { %3134 = vst.msk [vmem:[%s5665_s13 + $0x38] sm:$0xff] %vm3126_vm13, %v3115_v36  ;;  %4454 = vlog2.f32 %v2870_v35  ;;  %v4441_v37 = vpop.eup %4440  ;;  %v2786_v50 = vmul.f32 1.442695, %v2756_v55  ;;  %v5806_v40 = vadd.f32 %v5620_v2, %v5547_v47  ;;  %v2873_v60 = vmul.f32 -0.5, %v5781_v14 }
 0x2a0   : > { %v3114_v5 = vsel %vm5654_vm1, %v2966_v56, %v3096_v1  ;;  %4456 = vrcp.f32 %v3040_v10  ;;  %v4443_v61 = vpop.eup %4442  ;;  %v2719_v33 = vmax.f32 %v5739_v21, 0.0  ;;  %v3020_v12 = vmul.f32 1.442695, %v2990_v8 }
 0x2a1   : > { %3133 = vst.msk [vmem:[%s5665_s13 + $0x30] sm:$0xff] %vm3126_vm13, %v3114_v5  ;;  %4458 = vpow2.f32 %v3022_v0  ;;  %v5810_v43 = vpop.eup %4444  ;;  %v2881_v4 = vmul.f32 0.6931472, %v4443_v61  ;;  %v2884_v39 = vmul.f32 %v5760_v18, %v2883_v42  ;;  %v2741_v45 = vand.u32 2147483647, %v5806_v40 }
 0x2a2   : > { %4460 = vpow2.f32 %v2786_v50  ;;  %v4447_v46 = vpop.eup %4446  ;;  %vm2886_vm6 = vcmp.lt.f32.partialorder %v2885_v26, 0.0004427343  ;;  %v2897_v2 = vadd.f32 1.0, %v5810_v43  ;;  %v2718_v11 = vmax.f32 %v5751_v49, 0.0 }
 0x2a3   : > { %4462 = vpow2.f32 %v3020_v12  ;;  %v4449_v53 = vpop.eup %4448  ;;  %v2887_v62 = vsel %vm2886_vm6, %v2884_v39, %v2881_v4  ;;  %v3043_v17 = vadd.f32 1.0, %v4447_v46  ;;  %v2759_v63 = vsub.f32 0.0, %v2741_v45 }
 0x2a4   : > { %v2993_v19 = vsub.f32 0.0, %v5806_v40  ;;  %v4451_v20 = vpop.eup %4450  ;;  %v2969_v18 = vadd.f32 %v2887_v62, %v2717_v30  ;;  %v2874_v23 = vadd.f32 1.0, %v2873_v60  ;;  %v2876_v24 = vand.u32 2147483647, %v5781_v14 }
 0x2a5   : > { %4464 = vlog2.f32 %v2897_v2  ;;  %v3099_v22 = vsel %vm3089_vm9, %v4441_v37, %v5660_v7  ;;  %v2900_v6 = vmul.f32 -0.5, %v5810_v43  ;;  %v2903_v41 = vand.u32 2147483647, %v5810_v43 }
 0x2a6   : > { %v2888_v57 = vadd.f32 1.0, %v4449_v53  ;;  %v3117_v3 = vsel %vm5654_vm1, %v2969_v18, %v3099_v22  ;;  %4466 = vrcp.f32 %v3043_v17  ;;  %v3042_v13 = vadd.f32 1.0, %v4451_v20  ;;  %v4453_v30 = vpop.eup %4452 }
 0x2a7   : > { %v2792_v9 = vmul.f32 1.442695, %v2759_v63  ;;  %3136 = vst.msk [vmem:[%s5665_s13 + $0x48] sm:$0xff] %vm3126_vm13, %v3117_v3  ;;  %v2891_v29 = vmul.f32 -0.5, %v4449_v53  ;;  %v2721_v15 = vmax.f32 %v5756_v34, 0.0  ;;  %v2875_v25 = vmul.f32 %v5781_v14, %v2874_v23 }
 0x2a8   : > { %4468 = vlog2.f32 %v2888_v57  ;;  %v3026_v48 = vmul.f32 1.442695, %v2993_v19  ;;  %vm5831_vm7 = vcmp.lt.f32.partialorder %v2876_v24, 0.0004427343  ;;  %v2915_v51 = vadd.f32 1.0, %v4453_v30 }
 0x2a9   : > { %v4455_v7 = vpop.eup %4454  ;;  %4470 = vrcp.f32 %v3042_v13  ;;  %v2918_v52 = vmul.f32 -0.5, %v4453_v30  ;;  %v5837_v36 = vadd.f32 %v5547_v47, %v5625_v31  ;;  %v2901_v35 = vadd.f32 1.0, %v2900_v6 }
 0x2aa   : > { %v4457_v42 = vpop.eup %4456  ;;  %v2872_v32 = vmul.f32 0.6931472, %v4455_v7  ;;  %4472 = vpow2.f32 %v2792_v9  ;;  %vm5839_vm8 = vcmp.lt.f32.partialorder %v2903_v41, 0.0004427343  ;;  %v2894_v14 = vand.u32 2147483647, %v4449_v53 }
 0x2ab   : > { %v4459_v56 = vpop.eup %4458  ;;  %4474 = vlog2.f32 %v2915_v51  ;;  %v2892_v55 = vadd.f32 1.0, %v2891_v29  ;;  %v3098_v8 = vsel %vm3089_vm9, %v4457_v42, %v5692_v27  ;;  %v2921_v37 = vand.u32 2147483647, %v4453_v30 }
 0x2ac   : > { %v5843_v1 = vpop.eup %4460  ;;  %v2878_v10 = vsel %vm5831_vm7, %v2875_v25, %v2872_v32  ;;  %v3045_v5 = vadd.f32 1.0, %v4459_v56  ;;  %4476 = vpow2.f32 %v3026_v48  ;;  %v2919_v61 = vadd.f32 1.0, %v2918_v52 }
 0x2ad   : > { %v4463_v26 = vpop.eup %4462  ;;  %v2968_v31 = vadd.f32 %v2878_v10, %v2716_v44  ;;  %v2906_v50 = vadd.f32 1.0, %v5843_v1  ;;  %v2740_v12 = vand.u32 2147483647, %v5837_v36  ;;  %v2902_v45 = vmul.f32 %v5810_v43, %v2901_v35 }
 0x2ae   : > { %4478 = vrcp.f32 %v3045_v5  ;;  %v3044_v60 = vadd.f32 1.0, %v4463_v26  ;;  %v2992_v44 = vsub.f32 0.0, %v5837_v36  ;;  %v2893_v46 = vmul.f32 %v4449_v53, %v2892_v55 }
 0x2af   : > { %v4465_v4 = vpop.eup %4464  ;;  %v3116_v39 = vsel %vm5654_vm1, %v2968_v31, %v3098_v8  ;;  %4480 = vlog2.f32 %v2906_v50  ;;  %vm5860_vm10 = vcmp.lt.f32.partialorder %v2894_v14, 0.0004427343  ;;  %v2758_v62 = vsub.f32 0.0, %v2740_v12 }
 0x2b0   : > { %3135 = vst.msk [vmem:[%s5665_s13 + $0x40] sm:$0xff] %vm3126_vm13, %v3116_v39  ;;  %v2899_v27 = vmul.f32 0.6931472, %v4465_v4  ;;  %v4467_v17 = vpop.eup %4466  ;;  %v2909_v63 = vmul.f32 -0.5, %v5843_v1  ;;  %4482 = vrcp.f32 %v3044_v60  ;;  %v3024_v19 = vmul.f32 1.442695, %v2992_v44 }
 0x2b1   : > { %v5867_v43 = vadd.f32 %v5639_v58, %v5547_v47  ;;  %v2920_v23 = vmul.f32 %v4453_v30, %v2919_v61  ;;  %vm5871_vm11 = vcmp.lt.f32.partialorder %v2921_v37, 0.0004427343  ;;  %v2790_v24 = vmul.f32 1.442695, %v2758_v62 }
 0x2b2   : > { %v4469_v20 = vpop.eup %4468  ;;  %v2905_v18 = vsel %vm5839_vm8, %v2902_v45, %v2899_v27  ;;  %v2912_v57 = vand.u32 2147483647, %v5843_v1  ;;  %4484 = vpow2.f32 %v3024_v19  ;;  %v3101_v3 = vsel %vm3089_vm9, %v4467_v17, %v5739_v21 }
 0x2b3   : > { %v4471_v22 = vpop.eup %4470  ;;  %v2971_v6 = vadd.f32 %v2905_v18, %v2719_v33  ;;  %v2890_v41 = vmul.f32 0.6931472, %v4469_v20  ;;  %4486 = vpow2.f32 %v2790_v24  ;;  %v2743_v13 = vand.u32 2147483647, %v5867_v43 }
 0x2b4   : > { %v5878_v58 = vpop.eup %4472  ;;  %v2995_v9 = vsub.f32 0.0, %v5867_v43  ;;  %v2910_v48 = vadd.f32 1.0, %v2909_v63  ;;  %v5896_v42 = vadd.f32 %v5547_v47, %v5646_v16  ;;  %v3100_v32 = vsel %vm3089_vm9, %v4471_v22, %v5751_v49 }
 0x2b5   : > { %v4475_v30 = vpop.eup %4474  ;;  %v3119_v29 = vsel %vm5654_vm1, %v2971_v6, %v3101_v3  ;;  %v2896_v33 = vsel %vm5860_vm10, %v2893_v46, %v2890_v41  ;;  %v2933_v7 = vadd.f32 1.0, %v5878_v58  ;;  %v2761_v51 = vsub.f32 0.0, %v2743_v13 }
 0x2b6   : > { %v4477_v25 = vpop.eup %4476  ;;  %3138 = vst.msk [vmem:[%s5665_s13 + $0x58] sm:$0xff] %vm3126_vm13, %v3119_v29  ;;  %v2970_v21 = vadd.f32 %v2896_v33, %v2718_v11  ;;  %v2917_v54 = vmul.f32 0.6931472, %v4475_v30  ;;  %v3030_v56 = vmul.f32 1.442695, %v2995_v9  ;;  %v2720_v14 = vmax.f32 %v5769_v59, 0.0 }
 0x2b7   : > { %4488 = vlog2.f32 %v2933_v7  ;;  %v3047_v52 = vadd.f32 1.0, %v4477_v25  ;;  %v2796_v10 = vmul.f32 1.442695, %v2761_v51  ;;  %v2911_v49 = vmul.f32 %v5843_v1, %v2910_v48 }
 0x2b8   : > { %v4479_v35 = vpop.eup %4478  ;;  %v3118_v0 = vsel %vm5654_vm1, %v2970_v21, %v3100_v32  ;;  %v2923_v11 = vsel %vm5871_vm11, %v2920_v23, %v2917_v54  ;;  %v2936_v55 = vmul.f32 -0.5, %v5878_v58  ;;  %v2742_v31 = vand.u32 2147483647, %v5896_v42 }
 0x2b9   : > { %v4481_v47 = vpop.eup %4480  ;;  %3137 = vst.msk [vmem:[%s5665_s13 + $0x50] sm:$0xff] %vm3126_vm13, %v3118_v0  ;;  %v2973_v16 = vadd.f32 %v2923_v11, %v2721_v15  ;;  %4490 = vrcp.f32 %v3047_v52  ;;  %v3103_v5 = vsel %vm3089_vm9, %v4479_v35, %v5756_v34  ;;  %vm2913_vm12 = vcmp.lt.f32.partialorder %v2912_v57, 0.0004427343 }
 0x2ba   : > { %v2908_v26 = vmul.f32 0.6931472, %v4481_v47  ;;  %4492 = vpow2.f32 %v2796_v10  ;;  %v4483_v8 = vpop.eup %4482  ;;  %v2994_v15 = vsub.f32 0.0, %v5896_v42  ;;  %v2760_v50 = vsub.f32 0.0, %v2742_v31 }
 0x2bb   : > { %v3121_v37 = vsel %vm5654_vm1, %v2973_v16, %v3103_v5  ;;  %4494 = vpow2.f32 %v3030_v56  ;;  %v3102_v12 = vsel %vm3089_vm9, %v4483_v8, %v5769_v59  ;;  %v2937_v4 = vadd.f32 1.0, %v2936_v55 }
 0x2bc   : > { %3140 = vst.msk [vmem:[%s5665_s13 + $0x68] sm:$0xff] %vm3126_vm13, %v3121_v37  ;;  %v2914_v1 = vsel %vm2913_vm12, %v2911_v49, %v2908_v26  ;;  %v4485_v61 = vpop.eup %4484  ;;  %v2794_v45 = vmul.f32 1.442695, %v2760_v50  ;;  %v2939_v27 = vand.u32 2147483647, %v5878_v58  ;;  %v2723_v19 = vmax.f32 %v5806_v40, 0.0 }
 0x2bd   : > { %v2972_v60 = vadd.f32 %v2914_v1, %v2720_v14  ;;  %v4487_v34 = vpop.eup %4486  ;;  %v3046_v39 = vadd.f32 1.0, %v4485_v61  ;;  %v3028_v2 = vmul.f32 1.442695, %v2994_v15  ;;  %v2938_v63 = vmul.f32 %v5878_v58, %v2937_v4 }
 0x2be   : > { %v2924_v46 = vadd.f32 1.0, %v4487_v34  ;;  %vm2940_vm14 = vcmp.lt.f32.partialorder %v2939_v27, 0.0004427343  ;;  %v2927_v23 = vmul.f32 -0.5, %v4487_v34  ;;  %v2930_v3 = vand.u32 2147483647, %v4487_v34 }
 0x2bf   : > { %v3120_v44 = vsel %vm5654_vm1, %v2972_v60, %v3102_v12  ;;  %4496 = vrcp.f32 %v3046_v39  ;;  %v2725_v16 = vmax.f32 %v5867_v43, 0.0  ;;  %v2724_v50 = vmax.f32 %v5896_v42, 0.0 }
 0x2c0   : > { %3139 = vst.msk [vmem:[%s5665_s13 + $0x60] sm:$0xff] %vm3126_vm13, %v3120_v44  ;;  %4498 = vlog2.f32 %v2924_v46  ;;  %v2928_v58 = vadd.f32 1.0, %v2927_v23  ;;  %vm2931_vm15 = vcmp.lt.f32.partialorder %v2930_v3, 0.0004427343 }
 0x2c1   : > { %v4489_v62 = vpop.eup %4488  ;;  %4500 = vpow2.f32 %v2794_v45 }
 0x2c2   : > { %v2935_v17 = vmul.f32 0.6931472, %v4489_v62  ;;  %4502 = vpow2.f32 %v3028_v2  ;;  %v2929_v48 = vmul.f32 %v4487_v34, %v2928_v58 }
 0x2c3   : > { %v4491_v59 = vpop.eup %4490 }
 0x2c4   : > { %v4493_v20 = vpop.eup %4492  ;;  %v2941_v18 = vsel %vm2940_vm14, %v2938_v63, %v2935_v17  ;;  %v3105_v6 = vsel %vm3089_vm9, %v4491_v59, %v5806_v40  ;;  %v2722_v40 = vmax.f32 %v5837_v36, 0.0 }
 0x2c5   : > { %v4495_v53 = vpop.eup %4494  ;;  %v2975_v24 = vadd.f32 %v2941_v18, %v2723_v19  ;;  %v2951_v22 = vadd.f32 1.0, %v4493_v20  ;;  %v2954_v9 = vmul.f32 -0.5, %v4493_v20  ;;  %v2957_v52 = vand.u32 2147483647, %v4493_v20 }
 0x2c6   : > { %v3049_v41 = vadd.f32 1.0, %v4495_v53 }
 0x2c7   : > { %v3123_v57 = vsel %vm5654_vm1, %v2975_v24, %v3105_v6  ;;  %4504 = vlog2.f32 %v2951_v22  ;;  %v2955_v54 = vadd.f32 1.0, %v2954_v9  ;;  %vm2958_vm0 = vcmp.lt.f32.partialorder %v2957_v52, 0.0004427343 }
 0x2c8   : > { %3142 = vst.msk [vmem:[%s5665_s13 + $0x78] sm:$0xff] %vm3126_vm13, %v3123_v57  ;;  %4506 = vrcp.f32 %v3049_v41 }
 0x2c9   : > { %v4497_v13 = vpop.eup %4496  ;;  %v2956_v14 = vmul.f32 %v4493_v20, %v2955_v54 }
 0x2ca   : > { %v4499_v30 = vpop.eup %4498  ;;  %v3104_v56 = vsel %vm3089_vm9, %v4497_v13, %v5837_v36 }
 0x2cb   : > { %v4501_v29 = vpop.eup %4500  ;;  %v2926_v33 = vmul.f32 0.6931472, %v4499_v30 }
 0x2cc   : > { %v4503_v7 = vpop.eup %4502  ;;  %v2942_v25 = vadd.f32 1.0, %v4501_v29  ;;  %v2945_v10 = vmul.f32 -0.5, %v4501_v29  ;;  %v2948_v31 = vand.u32 2147483647, %v4501_v29 }
 0x2cd   : > { %v2932_v21 = vsel %vm2931_vm15, %v2929_v48, %v2926_v33  ;;  %v3048_v51 = vadd.f32 1.0, %v4503_v7 }
 0x2ce   : > { %v2974_v32 = vadd.f32 %v2932_v21, %v2722_v40  ;;  %4508 = vlog2.f32 %v2942_v25  ;;  %v2946_v5 = vadd.f32 1.0, %v2945_v10  ;;  %vm2949_vm2 = vcmp.lt.f32.partialorder %v2948_v31, 0.0004427343 }
 0x2cf   : > { %4510 = vrcp.f32 %v3048_v51 }
 0x2d0   : > { %v3122_v0 = vsel %vm5654_vm1, %v2974_v32, %v3104_v56  ;;  %v2947_v15 = vmul.f32 %v4501_v29, %v2946_v5 }
 0x2d1   : > { %v4505_v35 = vpop.eup %4504  ;;  %3141 = vst.msk [vmem:[%s5665_s13 + $0x70] sm:$0xff] %vm3126_vm13, %v3122_v0 }
 0x2d2   : > { %v2953_v11 = vmul.f32 0.6931472, %v4505_v35  ;;  %v4507_v47 = vpop.eup %4506 }
 0x2d3   : > { %v3107_v36 = vsel %vm3089_vm9, %v4507_v47, %v5867_v43 }
 0x2d4   : > { %v2959_v49 = vsel %vm2958_vm0, %v2956_v14, %v2953_v11 }
 0x2d5   : > { %v2977_v55 = vadd.f32 %v2959_v49, %v2725_v16 }
 0x2d7   : > { %v3125_v26 = vsel %vm5654_vm1, %v2977_v55, %v3107_v36 }
 0x2d8   : > { %3144 = vst.msk [vmem:[%s5665_s13 + $0x88] sm:$0xff] %vm3126_vm13, %v3125_v26  ;;  %v4509_v8 = vpop.eup %4508 }
 0x2d9   : > { %v2944_v37 = vmul.f32 0.6931472, %v4509_v8  ;;  %v4511_v1 = vpop.eup %4510 }
 0x2da   : > { %v3106_v43 = vsel %vm3089_vm9, %v4511_v1, %v5896_v42 }
 0x2db   : > { %v2950_v61 = vsel %vm2949_vm2, %v2947_v15, %v2944_v37 }
 0x2dc   : > { %v2976_v60 = vadd.f32 %v2950_v61, %v2724_v50 }
 0x2de   : > { %v3124_v34 = vsel %vm5654_vm1, %v2976_v60, %v3106_v43 }
 0x2df   : > { %3143 = vst.msk [vmem:[%s5665_s13 + $0x80] sm:$0xff] %vm3126_vm13, %v3124_v34 }
 0x2e0 PF: > { %s17_s25 = sadd.s32 1, %s4550_s25   ;;  %s6066_s21 = smov %s4542_s23 }
 0x2e1   : > { %p14_p7 = scmp.ge.s32.totalorder %s17_s25, 6   ;;  %s6067_s22 = smov %s4546_s24 }
 0x2e2   : > { %s6068_s23 = smov %s6071_s26  ;;  %s6069_s24 = smov %s6075_s27 }
 0x2e3   :  { %16 = sbr.rel (!%p14_p7) target bundleno = 3 (0x3), region = 90 }

</bundles_post_ra>
